<compile_context>
chip_gen: v7x
topology: tpu7x:2x2x1
jax: 0.10.0
libtpu: 0.0.40
codegen_flags: <defaults>
</compile_context>

<pallas_src>
import functools

import jax
import jax.numpy as jnp
from jax.experimental import pallas as pl
from jax.experimental.pallas import tpu as pltpu


def _round_up(x, m):
    return (x + m - 1) // m * m


def _default_bf16_epilogue():
    """bf16 bias/relu epilogues only on chips with a packed-bf16 VPU (v6e/v7x)."""
    try:
        kind = jax.devices()[0].device_kind.lower()
    except Exception:
        return True
    for tag in ("v2", "v3", "v4", "v5 lite", "v5e", "v5lite"):
        if tag in kind:
            return False
    return True


def _mlp_deg_kernel(
    xT_ref,          # [Kp, T]   bf16  BN-folded / deg-augmented input tile
    dd_ref,          # [2,  T]   f32   row 0 = deg_sum, row 1 = d_p
    w1_ref, b1_ref,  # [H1p, Kp ] bf16 , [H1p, 1] epi  (BN + emb_pro folded in)
    w2_ref, b2_ref,  # [H1p, H1p] bf16 , [H1p, 1] epi
    w3_ref, b3_ref,  # [H2p, H1p] bf16 , [H2p, 1] epi
    w4_ref,          # [D4p, H2p] bf16
    small_ref,       # [D4p, 8] f32: cols b4|w5|w1wl|b1wl|w2wl ; [0,5]=b5, [0,6]=b2wl
    out_ref,         # [1, T]  f32
    *, less_para, mse, epi_dtype,
):
    f32 = jnp.float32
    bf16 = jnp.bfloat16

    def layer(w_ref, b_ref, h):
        # MXU matmul, f32 accumulation; bias-add + relu in epi_dtype
        # (bf16 on v6e/v7x halves VALU work + vreg pressure; f32 on v5e).
        acc = jnp.dot(w_ref[...], h, preferred_element_type=f32)
        acc = acc.astype(epi_dtype) + b_ref[...]
        return jnp.maximum(acc, 0).astype(bf16)

    h = layer(w1_ref, b1_ref, xT_ref[...])            # linear1 (+ folded BN/emb_pro)
    if less_para == 0:
        h = layer(w2_ref, b2_ref, h)                  # linear2
    h = layer(w3_ref, b3_ref, h)                      # linear3

    sm = small_ref[...]                               # tiny packed params

    # linear4: only D4p (=16) output rows -> f32 epilogue here is cheap & exact.
    h4 = jnp.dot(w4_ref[...], h, preferred_element_type=f32)
    h4 = jnp.maximum(h4 + sm[:, 0:1], 0.0)            # [D4p, T]

    # dropout(p=0.5, training=False) -> identity (eval-mode semantics)

    # linear5: Linear(D, 1) as a sublane reduction -> lane-dense [1, T].
    out = jnp.sum(h4 * sm[:, 1:2], axis=0, keepdims=True) + sm[0:1, 5:6]

    # wl path: alp = relu(linear1_wl(deg)); wl = linear2_wl(alp) — rank-1, VPU/XLU, f32.
    deg = dd_ref[0:1, :]                              # [1, T]
    dp = dd_ref[1:2, :]
    alp = jnp.maximum(sm[:, 2:3] * deg + sm[:, 3:4], 0.0)              # [D4p, T]
    wl = jnp.sum(alp * sm[:, 4:5], axis=0, keepdims=True) + sm[0:1, 6:7]

    out = out + wl * dp
    if mse:
        out = jax.nn.sigmoid(out)

    out_ref[...] = out.astype(out_ref.dtype)


def mlp_deg_forward(x, d_p, label, node_id, node_deg, params, *,
                    emb_pro=1, less_para=0, mse=True, tile_n=None,
                    bf16_epilogue=None):
    """Gather + BN/emb_pro folding + padding/transpose as XLA glue; MLP hot path in Pallas."""
    f32 = jnp.float32
    bf16 = jnp.bfloat16

    n = label.shape[0]
    assert x.shape[0] == n
    d = x.shape[1]

    h1 = 20 * d
    h2 = 10 * d
    kp = _round_up(d + 1, 16)        # features + deg row, bf16 sublane-pack aligned
    h1p = _round_up(h1, 128)
    h2p = _round_up(h2, 128)
    d4p = _round_up(d, 16)           # linear4 out / linear5 in (minimal legal padding)

    if bf16_epilogue is None:
        bf16_epilogue = _default_bf16_epilogue()
    epi_dtype = bf16 if bf16_epilogue else f32

    # ---- tile selection: big lane tiles (multiple of 256 once raised), but keep
    #      >= 2 grid steps for large batches so v7x's 2 TensorCores both get work.
    if tile_n is None:
        if n <= 512:
            tile_n = 256 if n > 128 else 128
        else:
            tile_n = 2048
            while tile_n > 512 and _round_up(n, tile_n) // tile_n < 2:
                tile_n //= 2
    n_pad = _round_up(n, tile_n)

    # ---- XLA glue: deg gather, BN + emb_pro fold into linear1, pad / transpose ----
    # TODO(synk): the data-dependent node_deg[node_id[...]] per-row gather stays
    # as XLA glue; it is not expressible as a rectangular BlockSpec tile.
    even = jnp.arange(0, 2 * n, 2)
    odd = jnp.arange(1, 2 * n, 2)
    deg_sum = (node_deg[node_id[even]].astype(f32)
               + node_deg[node_id[odd]].astype(f32))                     # [n]

    dd = jnp.zeros((2, n_pad), f32)
    dd = dd.at[0, :n].set(deg_sum)
    dd = dd.at[1, :n].set(d_p.reshape(n).astype(f32))

    # BatchNorm1d (eval): y = x*scale + shift, folded into linear1.
    eps = 1e-5
    scale = (params["bn_gamma"] / jnp.sqrt(params["bn_var"] + eps)).astype(f32)
    shift = (params["bn_beta"] - params["bn_mean"] * scale).astype(f32)

    w1t = params["w1"].T.astype(f32)                                     # [h1, d]
    if emb_pro == 1:
        fold_shift = shift + params["bmap"].reshape(d).astype(f32)
        col_deg = w1t @ params["wmap"].reshape(d, 1).astype(f32)         # [h1, 1]
    else:
        fold_shift = shift
        col_deg = jnp.zeros((h1, 1), f32)
    w1_fold = w1t * scale.reshape(1, d)                                  # BN scale -> w1
    b1_fold = (params["b1"].reshape(h1, 1).astype(f32)
               + w1t @ fold_shift.reshape(d, 1))                         # BN shift (+ bmap) -> b1
    w1_aug = jnp.concatenate([w1_fold, col_deg], axis=1)                 # [h1, d+1]

    # Augmented input (bf16 DMA): rows 0..d-1 = x^T, row d = deg_sum, rest zero.
    xT = jnp.zeros((kp, n_pad), f32)
    xT = xT.at[:d, :n].set(x.astype(f32).T)
    xT = xT.at[d, :n].set(deg_sum)
    xT = xT.astype(bf16)

    def pad2(a, rows, cols):
        return jnp.pad(a, ((0, rows - a.shape[0]), (0, cols - a.shape[1])))

    # Weights stored [in, out]; kernel wants transposed [out, in], zero-padded.
    w1a = pad2(w1_aug, h1p, kp).astype(bf16)
    b1c = pad2(b1_fold, h1p, 1).astype(epi_dtype)
    w2t = pad2(params["w2"].T.astype(f32), h1p, h1p).astype(bf16)
    b2c = pad2(params["b2"].reshape(h1, 1).astype(f32), h1p, 1).astype(epi_dtype)
    w3t = pad2(params["w3"].T.astype(f32), h2p, h1p).astype(bf16)
    b3c = pad2(params["b3"].reshape(h2, 1).astype(f32), h2p, 1).astype(epi_dtype)
    w4t = pad2(params["w4"].T.astype(f32), d4p, h2p).astype(bf16)

    # Tiny rank-1/scalar params packed into one [d4p, 8] block (fewer operands,
    # fewer prologue DMAs / VMEM buffers).  Zero-padded rows stay inert
    # (relu(0)=0 and zero multipliers in the sublane reductions).
    small = jnp.zeros((d4p, 8), f32)
    small = small.at[:d, 0].set(params["b4"].reshape(d).astype(f32))
    small = small.at[:d, 1].set(params["w5"].reshape(d).astype(f32))
    small = small.at[:d, 2].set(params["w1wl"].reshape(d).astype(f32))
    small = small.at[:d, 3].set(params["b1wl"].reshape(d).astype(f32))
    small = small.at[:d, 4].set(params["w2wl"].reshape(d).astype(f32))
    small = small.at[0, 5].set(params["b5"].reshape(()).astype(f32))
    small = small.at[0, 6].set(params["b2wl"].reshape(()).astype(f32))

    streamed = (xT, dd)
    residents = (w1a, b1c, w2t, b2c, w3t, b3c, w4t, small)
    inputs = streamed + residents

    # ---- BlockSpecs: batch-tiled activations, VMEM-resident weights -------------
    in_specs = [
        pl.BlockSpec((kp, tile_n), lambda i: (0, i)),       # xT (bf16, streamed)
        pl.BlockSpec((2, tile_n), lambda i: (0, i)),        # deg/d_p (f32, streamed)
    ] + [
        # Constant index_map: DMA'd once, stays VMEM-resident across grid steps.
        # (pl.Buffered(1) would halve their footprint but the resident set is
        #  well under 1 MiB, so VMEM is nowhere near binding.)
        pl.BlockSpec(a.shape, lambda i: (0, 0)) for a in residents
    ]
    out_specs = pl.BlockSpec((1, tile_n), lambda i: (0, i))  # lane-dense output

    flops = 2 * n_pad * (h1p * kp
                         + (h1p * h1p if less_para == 0 else 0)
                         + h2p * h1p
                         + d4p * h2p)
    bytes_accessed = int(sum(int(a.size) * a.dtype.itemsize for a in inputs)
                         + n_pad * 4)
    cost = pl.CostEstimate(flops=int(flops),
                           transcendentals=int(n_pad if mse else 0),
                           bytes_accessed=bytes_accessed)

    kernel = functools.partial(_mlp_deg_kernel, less_para=less_para, mse=mse,
                               epi_dtype=epi_dtype)

    out = pl.pallas_call(
        kernel,
        out_shape=jax.ShapeDtypeStruct((1, n_pad), f32),
        grid=(n_pad // tile_n,),
        in_specs=in_specs,
        out_specs=out_specs,
        compiler_params=pltpu.CompilerParams(
            dimension_semantics=("parallel",),        # shard batch tiles over TCs
            vmem_limit_bytes=32 * 1024 * 1024,        # explicit (v5e default is 16 MiB)
        ),
        cost_estimate=cost,
    )(*inputs)

    return out[0, :n].reshape(n, 1)


def init_params(key, input_size):
    """Deterministic synthetic parameters, shapes per MLP_Deg.__init__."""
    d = input_size
    ks = jax.random.split(key, 16)

    def w(k, i, o):
        return jax.random.normal(k, (i, o), jnp.float32) / jnp.sqrt(jnp.float32(i))

    return {
        # BatchNorm1d(input_size)
        "bn_gamma": 1.0 + 0.1 * jax.random.normal(ks[0], (d,), jnp.float32),
        "bn_beta": 0.1 * jax.random.normal(ks[1], (d,), jnp.float32),
        "bn_mean": 0.1 * jax.random.normal(ks[2], (d,), jnp.float32),
        "bn_var": 0.5 + jnp.abs(jax.random.normal(ks[3], (d,), jnp.float32)),
        # Linear layers stored as [in, out]
        "w1": w(ks[4], d, 20 * d), "b1": 0.01 * jnp.ones((1, 20 * d), jnp.float32),
        "w2": w(ks[5], 20 * d, 20 * d), "b2": 0.01 * jnp.ones((1, 20 * d), jnp.float32),
        "w3": w(ks[6], 20 * d, 10 * d), "b3": 0.01 * jnp.ones((1, 10 * d), jnp.float32),
        "w4": w(ks[7], 10 * d, d), "b4": 0.01 * jnp.ones((1, d), jnp.float32),
        # Linear(d, 1): weight row [1, d], fan_in = d
        "w5": jax.random.normal(ks[8], (1, d), jnp.float32) / jnp.sqrt(jnp.float32(d)),
        "b5": 0.01 * jnp.ones((1, 1), jnp.float32),
        # Linear(1, d) layers (scaled to keep the synthetic test well conditioned)
        "wmap": 0.1 * jax.random.normal(ks[9], (1, d), jnp.float32),
        "bmap": 0.01 * jnp.ones((1, d), jnp.float32),
        "w1wl": 0.1 * jax.random.normal(ks[10], (1, d), jnp.float32),
        "b1wl": 0.01 * jnp.ones((1, d), jnp.float32),
        # Linear(d, 1)
        "w2wl": jax.random.normal(ks[11], (1, d), jnp.float32) / jnp.sqrt(jnp.float32(d)),
        "b2wl": 0.01 * jnp.ones((1, 1), jnp.float32),
    }


def reference_forward(x, d_p, label, node_id, node_deg, params,
                      *, emb_pro=1, less_para=0, mse=True):
    """Plain-JAX f32 reference (mirrors the PyTorch forward, eval mode)."""
    n = label.shape[0]
    eps = 1e-5
    out = ((x - params["bn_mean"]) / jnp.sqrt(params["bn_var"] + eps)
           * params["bn_gamma"] + params["bn_beta"])
    even = jnp.arange(0, 2 * n, 2)
    odd = jnp.arange(1, 2 * n, 2)
    deg = (node_deg[node_id[even]].astype(jnp.float32)
           + node_deg[node_id[odd]].astype(jnp.float32)).reshape(n, 1)
    relu = lambda v: jnp.maximum(v, 0.0)
    if emb_pro == 1:
        out = out + deg @ params["wmap"] + params["bmap"]
    out = relu(out @ params["w1"] + params["b1"])
    if less_para == 0:
        out = relu(out @ params["w2"] + params["b2"])
    out = relu(out @ params["w3"] + params["b3"])
    out = relu(out @ params["w4"] + params["b4"])
    out = out @ params["w5"].T + params["b5"]
    alp = relu(deg @ params["w1wl"] + params["b1wl"])
    out = out + (alp @ params["w2wl"].T + params["b2wl"]) * d_p.reshape(n, 1)
    if mse:
        out = jax.nn.sigmoid(out)
    return out


if __name__ == "__main__":
    key = jax.random.PRNGKey(0)
    k_param, k_x, k_dp, k_id, k_deg = jax.random.split(key, 5)

    input_size = 8     # feature dim D
    n = 16             # batch (number of label rows)
    num_nodes = 32
    walk_len, heads = 4, 2  # unused in forward (kept for parity with __init__)

    params = init_params(k_param, input_size)

    x = jax.random.normal(k_x, (n, input_size), jnp.float32)
    d_p = jax.random.normal(k_dp, (n,), jnp.float32)
    label = jnp.zeros((n, 1), jnp.float32)                      # only shape is used
    node_id = jax.random.randint(k_id, (2 * n,), 0, num_nodes, jnp.int32)
    node_deg = jax.random.randint(k_deg, (num_nodes,), 0, 10, jnp.int32)

    out = mlp_deg_forward(x, d_p, label, node_id, node_deg, params,
                          emb_pro=1, less_para=0, mse=True)
    out = jax.block_until_ready(out)

    ref = reference_forward(x, d_p, label, node_id, node_deg, params,
                            emb_pro=1, less_para=0, mse=True)
    assert out.shape == (n, 1)
    # bf16 weights/activations (and bf16 epilogues on v6e/v7x) on the matmul
    # path -> relaxed tolerance vs the f32 reference.
    assert jnp.allclose(out, ref, atol=3e-2), "mismatch vs JAX reference"

    print("KERNEL_OK")
</pallas_src>

<mosaic_0001>
module attributes {stable_mosaic.version = 11 : i64} {
  func.func @_mlp_deg_kernel(%arg0: i32, %arg1: memref<16x128xbf16, #tpu.memory_space<vmem>>, %arg2: memref<2x128xf32, #tpu.memory_space<vmem>>, %arg3: memref<256x16xbf16, #tpu.memory_space<vmem>>, %arg4: memref<256x1xbf16, #tpu.memory_space<vmem>>, %arg5: memref<256x256xbf16, #tpu.memory_space<vmem>>, %arg6: memref<256x1xbf16, #tpu.memory_space<vmem>>, %arg7: memref<128x256xbf16, #tpu.memory_space<vmem>>, %arg8: memref<128x1xbf16, #tpu.memory_space<vmem>>, %arg9: memref<16x128xbf16, #tpu.memory_space<vmem>>, %arg10: memref<16x8xf32, #tpu.memory_space<vmem>>, %arg11: memref<1x128xf32, #tpu.memory_space<vmem>>) attributes {dimension_semantics = [#tpu.dimension_semantics<parallel>], iteration_bounds = array<i64: 1>, scalar_prefetch = 0 : i64, scratch_operands = 0 : i64, tpu.core_type = #tpu.core_type<tc>, window_params = [{transform_indices = @transform_0, window_bounds = array<i64: 16, 128>}, {transform_indices = @transform_1, window_bounds = array<i64: 2, 128>}, {pipeline_mode = #tpu.pipeline_mode<synchronous>, transform_indices = @transform_2, window_bounds = array<i64: 256, 16>}, {pipeline_mode = #tpu.pipeline_mode<synchronous>, transform_indices = @transform_3, window_bounds = array<i64: 256, 1>}, {pipeline_mode = #tpu.pipeline_mode<synchronous>, transform_indices = @transform_4, window_bounds = array<i64: 256, 256>}, {pipeline_mode = #tpu.pipeline_mode<synchronous>, transform_indices = @transform_5, window_bounds = array<i64: 256, 1>}, {pipeline_mode = #tpu.pipeline_mode<synchronous>, transform_indices = @transform_6, window_bounds = array<i64: 128, 256>}, {pipeline_mode = #tpu.pipeline_mode<synchronous>, transform_indices = @transform_7, window_bounds = array<i64: 128, 1>}, {pipeline_mode = #tpu.pipeline_mode<synchronous>, transform_indices = @transform_8, window_bounds = array<i64: 16, 128>}, {pipeline_mode = #tpu.pipeline_mode<synchronous>, transform_indices = @transform_9, window_bounds = array<i64: 16, 8>}, {transform_indices = @transform_10, window_bounds = array<i64: 1, 128>}]} {
    %c0 = arith.constant 0 : index
    %c0_0 = arith.constant 0 : index
    %0 = vector.load %arg1[%c0, %c0_0] : memref<16x128xbf16, #tpu.memory_space<vmem>>, vector<16x128xbf16>
    %c0_1 = arith.constant 0 : index
    %c0_2 = arith.constant 0 : index
    %1 = vector.load %arg3[%c0_1, %c0_2] : memref<256x16xbf16, #tpu.memory_space<vmem>>, vector<256x16xbf16>
    %cst = arith.constant dense<0.000000e+00> : vector<256x128xf32>
    %2 = tpu.matmul %1, %0, %cst {dimension_numbers = #tpu.dot_dimension_numbers<[1], [0], [0], [1], [0, 0, 1, 1], [], []>} : vector<256x16xbf16>, vector<16x128xbf16>, vector<256x128xf32> -> vector<256x128xf32>
    %3 = arith.truncf %2 : vector<256x128xf32> to vector<256x128xbf16>
    %c0_3 = arith.constant 0 : index
    %c0_4 = arith.constant 0 : index
    %4 = vector.load %arg4[%c0_3, %c0_4] : memref<256x1xbf16, #tpu.memory_space<vmem>>, vector<256x1xbf16>
    %5 = vector.broadcast %4 : vector<256x1xbf16> to vector<256x128xbf16>
    %6 = arith.addf %3, %5 : vector<256x128xbf16>
    %cst_5 = arith.constant 0.000000e+00 : bf16
    %7 = vector.broadcast %cst_5 : bf16 to vector<256x128xbf16>
    %8 = arith.maximumf %6, %7 : vector<256x128xbf16>
    %c0_6 = arith.constant 0 : index
    %c0_7 = arith.constant 0 : index
    %9 = vector.load %arg5[%c0_6, %c0_7] : memref<256x256xbf16, #tpu.memory_space<vmem>>, vector<256x256xbf16>
    %cst_8 = arith.constant dense<0.000000e+00> : vector<256x128xf32>
    %10 = tpu.matmul %9, %8, %cst_8 {dimension_numbers = #tpu.dot_dimension_numbers<[1], [0], [0], [1], [0, 0, 1, 1], [], []>} : vector<256x256xbf16>, vector<256x128xbf16>, vector<256x128xf32> -> vector<256x128xf32>
    %11 = arith.truncf %10 : vector<256x128xf32> to vector<256x128xbf16>
    %c0_9 = arith.constant 0 : index
    %c0_10 = arith.constant 0 : index
    %12 = vector.load %arg6[%c0_9, %c0_10] : memref<256x1xbf16, #tpu.memory_space<vmem>>, vector<256x1xbf16>
    %13 = vector.broadcast %12 : vector<256x1xbf16> to vector<256x128xbf16>
    %14 = arith.addf %11, %13 : vector<256x128xbf16>
    %cst_11 = arith.constant 0.000000e+00 : bf16
    %15 = vector.broadcast %cst_11 : bf16 to vector<256x128xbf16>
    %16 = arith.maximumf %14, %15 : vector<256x128xbf16>
    %c0_12 = arith.constant 0 : index
    %c0_13 = arith.constant 0 : index
    %17 = vector.load %arg7[%c0_12, %c0_13] : memref<128x256xbf16, #tpu.memory_space<vmem>>, vector<128x256xbf16>
    %cst_14 = arith.constant dense<0.000000e+00> : vector<128x128xf32>
    %18 = tpu.matmul %17, %16, %cst_14 {dimension_numbers = #tpu.dot_dimension_numbers<[1], [0], [0], [1], [0, 0, 1, 1], [], []>} : vector<128x256xbf16>, vector<256x128xbf16>, vector<128x128xf32> -> vector<128x128xf32>
    %19 = arith.truncf %18 : vector<128x128xf32> to vector<128x128xbf16>
    %c0_15 = arith.constant 0 : index
    %c0_16 = arith.constant 0 : index
    %20 = vector.load %arg8[%c0_15, %c0_16] : memref<128x1xbf16, #tpu.memory_space<vmem>>, vector<128x1xbf16>
    %21 = vector.broadcast %20 : vector<128x1xbf16> to vector<128x128xbf16>
    %22 = arith.addf %19, %21 : vector<128x128xbf16>
    %cst_17 = arith.constant 0.000000e+00 : bf16
    %23 = vector.broadcast %cst_17 : bf16 to vector<128x128xbf16>
    %24 = arith.maximumf %22, %23 : vector<128x128xbf16>
    %c0_18 = arith.constant 0 : index
    %c0_19 = arith.constant 0 : index
    %25 = vector.load %arg10[%c0_18, %c0_19] : memref<16x8xf32, #tpu.memory_space<vmem>>, vector<16x8xf32>
    %c0_20 = arith.constant 0 : index
    %c0_21 = arith.constant 0 : index
    %26 = vector.load %arg9[%c0_20, %c0_21] : memref<16x128xbf16, #tpu.memory_space<vmem>>, vector<16x128xbf16>
    %cst_22 = arith.constant dense<0.000000e+00> : vector<16x128xf32>
    %27 = tpu.matmul %26, %24, %cst_22 {dimension_numbers = #tpu.dot_dimension_numbers<[1], [0], [0], [1], [0, 0, 1, 1], [], []>} : vector<16x128xbf16>, vector<128x128xbf16>, vector<16x128xf32> -> vector<16x128xf32>
    %28 = vector.extract_strided_slice %25 {offsets = [0, 0], sizes = [16, 1], strides = [1, 1]} : vector<16x8xf32> to vector<16x1xf32>
    %29 = vector.broadcast %28 : vector<16x1xf32> to vector<16x128xf32>
    %30 = arith.addf %27, %29 : vector<16x128xf32>
    %cst_23 = arith.constant 0.000000e+00 : f32
    %31 = vector.broadcast %cst_23 : f32 to vector<16x128xf32>
    %32 = arith.maximumf %30, %31 : vector<16x128xf32>
    %33 = vector.extract_strided_slice %25 {offsets = [0, 1], sizes = [16, 1], strides = [1, 1]} : vector<16x8xf32> to vector<16x1xf32>
    %34 = vector.broadcast %33 : vector<16x1xf32> to vector<16x128xf32>
    %35 = arith.mulf %32, %34 : vector<16x128xf32>
    %cst_24 = arith.constant dense<0.000000e+00> : vector<128xf32>
    %36 = vector.multi_reduction <add>, %35, %cst_24 [0] : vector<16x128xf32> to vector<128xf32>
    %37 = vector.shape_cast %36 : vector<128xf32> to vector<1x128xf32>
    %38 = vector.extract_strided_slice %25 {offsets = [0, 5], sizes = [1, 1], strides = [1, 1]} : vector<16x8xf32> to vector<1x1xf32>
    %39 = vector.broadcast %38 : vector<1x1xf32> to vector<1x128xf32>
    %40 = arith.addf %37, %39 : vector<1x128xf32>
    %c0_25 = arith.constant 0 : index
    %c0_26 = arith.constant 0 : index
    %41 = vector.load %arg2[%c0_25, %c0_26] : memref<2x128xf32, #tpu.memory_space<vmem>>, vector<1x128xf32>
    %c1 = arith.constant 1 : index
    %c0_27 = arith.constant 0 : index
    %42 = vector.load %arg2[%c1, %c0_27] : memref<2x128xf32, #tpu.memory_space<vmem>>, vector<1x128xf32>
    %43 = vector.extract_strided_slice %25 {offsets = [0, 2], sizes = [16, 1], strides = [1, 1]} : vector<16x8xf32> to vector<16x1xf32>
    %44 = vector.broadcast %43 : vector<16x1xf32> to vector<16x128xf32>
    %45 = vector.broadcast %41 : vector<1x128xf32> to vector<16x128xf32>
    %46 = arith.mulf %44, %45 : vector<16x128xf32>
    %47 = vector.extract_strided_slice %25 {offsets = [0, 3], sizes = [16, 1], strides = [1, 1]} : vector<16x8xf32> to vector<16x1xf32>
    %48 = vector.broadcast %47 : vector<16x1xf32> to vector<16x128xf32>
    %49 = arith.addf %46, %48 : vector<16x128xf32>
    %cst_28 = arith.constant 0.000000e+00 : f32
    %50 = vector.broadcast %cst_28 : f32 to vector<16x128xf32>
    %51 = arith.maximumf %49, %50 : vector<16x128xf32>
    %52 = vector.extract_strided_slice %25 {offsets = [0, 4], sizes = [16, 1], strides = [1, 1]} : vector<16x8xf32> to vector<16x1xf32>
    %53 = vector.broadcast %52 : vector<16x1xf32> to vector<16x128xf32>
    %54 = arith.mulf %51, %53 : vector<16x128xf32>
    %cst_29 = arith.constant dense<0.000000e+00> : vector<128xf32>
    %55 = vector.multi_reduction <add>, %54, %cst_29 [0] : vector<16x128xf32> to vector<128xf32>
    %56 = vector.shape_cast %55 : vector<128xf32> to vector<1x128xf32>
    %57 = vector.extract_strided_slice %25 {offsets = [0, 6], sizes = [1, 1], strides = [1, 1]} : vector<16x8xf32> to vector<1x1xf32>
    %58 = vector.broadcast %57 : vector<1x1xf32> to vector<1x128xf32>
    %59 = arith.addf %56, %58 : vector<1x128xf32>
    %60 = arith.mulf %59, %42 : vector<1x128xf32>
    %61 = arith.addf %40, %60 : vector<1x128xf32>
    %62 = arith.negf %61 : vector<1x128xf32>
    %63 = math.exp %62 : vector<1x128xf32>
    %cst_30 = arith.constant 1.000000e+00 : f32
    %64 = vector.broadcast %cst_30 : f32 to vector<1x128xf32>
    %65 = arith.addf %64, %63 : vector<1x128xf32>
    %66 = arith.divf %64, %65 : vector<1x128xf32>
    %c0_31 = arith.constant 0 : index
    %c0_32 = arith.constant 0 : index
    %67 = vector.load %arg11[%c0_31, %c0_32] : memref<1x128xf32, #tpu.memory_space<vmem>>, vector<1x128xf32>
    tpu.vector_store %arg11[%c0_31, %c0_32], %66 {strides = array<i32>} : memref<1x128xf32, #tpu.memory_space<vmem>>, vector<1x128xf32>,
    return
  }
  func.func @transform_0(%arg0: i32) -> (i32, i32) {
    %c0_i32 = arith.constant 0 : i32
    %c0_i32_0 = arith.constant 0 : i32
    return %c0_i32, %arg0 : i32, i32
  }
  func.func @transform_1(%arg0: i32) -> (i32, i32) {
    %c0_i32 = arith.constant 0 : i32
    %c0_i32_0 = arith.constant 0 : i32
    return %c0_i32, %arg0 : i32, i32
  }
  func.func @transform_2(%arg0: i32) -> (i32, i32) {
    %c0_i32 = arith.constant 0 : i32
    %c0_i32_0 = arith.constant 0 : i32
    %c0_i32_1 = arith.constant 0 : i32
    return %c0_i32, %c0_i32_0 : i32, i32
  }
  func.func @transform_3(%arg0: i32) -> (i32, i32) {
    %c0_i32 = arith.constant 0 : i32
    %c0_i32_0 = arith.constant 0 : i32
    %c0_i32_1 = arith.constant 0 : i32
    return %c0_i32, %c0_i32_0 : i32, i32
  }
  func.func @transform_4(%arg0: i32) -> (i32, i32) {
    %c0_i32 = arith.constant 0 : i32
    %c0_i32_0 = arith.constant 0 : i32
    %c0_i32_1 = arith.constant 0 : i32
    return %c0_i32, %c0_i32_0 : i32, i32
  }
  func.func @transform_5(%arg0: i32) -> (i32, i32) {
    %c0_i32 = arith.constant 0 : i32
    %c0_i32_0 = arith.constant 0 : i32
    %c0_i32_1 = arith.constant 0 : i32
    return %c0_i32, %c0_i32_0 : i32, i32
  }
  func.func @transform_6(%arg0: i32) -> (i32, i32) {
    %c0_i32 = arith.constant 0 : i32
    %c0_i32_0 = arith.constant 0 : i32
    %c0_i32_1 = arith.constant 0 : i32
    return %c0_i32, %c0_i32_0 : i32, i32
  }
  func.func @transform_7(%arg0: i32) -> (i32, i32) {
    %c0_i32 = arith.constant 0 : i32
    %c0_i32_0 = arith.constant 0 : i32
    %c0_i32_1 = arith.constant 0 : i32
    return %c0_i32, %c0_i32_0 : i32, i32
  }
  func.func @transform_8(%arg0: i32) -> (i32, i32) {
    %c0_i32 = arith.constant 0 : i32
    %c0_i32_0 = arith.constant 0 : i32
    %c0_i32_1 = arith.constant 0 : i32
    return %c0_i32, %c0_i32_0 : i32, i32
  }
  func.func @transform_9(%arg0: i32) -> (i32, i32) {
    %c0_i32 = arith.constant 0 : i32
    %c0_i32_0 = arith.constant 0 : i32
    %c0_i32_1 = arith.constant 0 : i32
    return %c0_i32, %c0_i32_0 : i32, i32
  }
  func.func @transform_10(%arg0: i32) -> (i32, i32) {
    %c0_i32 = arith.constant 0 : i32
    %c0_i32_0 = arith.constant 0 : i32
    return %c0_i32, %arg0 : i32, i32
  }
}

</mosaic_0001>

<bundles_post_ra>
// kernel: tpu_custom_call.1
= control target key start
LH: loop header
LB: loop body
LE: loop exit
PB: predicated region body
PF: predicated region fallthrough
CT: control target
= control target key end

     0   :  { %v2994_v3 = vmov 0   ;;  %vm157_vm0 = vcmask 130048   ;;  %s3912_s0 = inlined_call_operand.vmem [shape: bf16[16,128], index: 0, kind: input, shape index: {}]   ;;  %s3913_s1 = inlined_call_operand.vmem [shape: f32[2,128], index: 1, kind: input, shape index: {}]   ;;  %s3914_s2 = inlined_call_operand.vmem [shape: bf16[256,16], index: 2, kind: input, shape index: {}]   ;;  %s3915_s3 = inlined_call_operand.vmem [shape: bf16[256,1], index: 3, kind: input, shape index: {}]   ;;  %s3916_s4 = inlined_call_operand.vmem [shape: bf16[256,256], index: 4, kind: input, shape index: {}]   ;;  %s3917_s5 = inlined_call_operand.vmem [shape: bf16[256,1], index: 5, kind: input, shape index: {}]   ;;  %s3918_s6 = inlined_call_operand.vmem [shape: bf16[128,256], index: 6, kind: input, shape index: {}]   ;;  %s3919_s7 = inlined_call_operand.vmem [shape: bf16[128,1], index: 7, kind: input, shape index: {}]   ;;  %s3920_s8 = inlined_call_operand.vmem [shape: bf16[16,128], index: 8, kind: input, shape index: {}]   ;;  %s3921_s9 = inlined_call_operand.vmem [shape: f32[16,8], index: 9, kind: input, shape index: {}]   ;;  %s3922_s10 = inlined_call_operand.hbm [shape: f32[1,128], index: 10, kind: output, shape index: {}]  }
   0x1   :  { %v399_v0 = vld [vmem:[%s3915_s3 + $0x40] sm:$0xf]  ;;  %2863 = vset.pattern.permute.xlu1 %v2994_v3  ;;  %2862 = vset.pattern.permute.xlu0 %v2994_v3  ;;  %v400_v4 = vld [vmem:[%s3915_s3 + $0x44] sm:$0xf]  ;;  %v2878_v7 = vld [vmem:[%s3914_s2 + $0x8] sm:$0xff]  }
   0x2   :  { %v383_v1 = vld [vmem:[%s3915_s3] sm:$0xf]  ;;  %609 = vperm.xlu0 %2862, %v399_v0   ;;  %v384_v5 = vld [vmem:[%s3915_s3 + $0x4] sm:$0xf]  ;;  %v2879_v8 = vld [vmem:[%s3914_s2 + $0x10] sm:$0xff]  }
   0x3   :  { %v2876_v2 = vld [vmem:[%s3912_s0] sm:$0xff]   ;;  %417 = vperm.xlu1 %2863, %v383_v1   ;;  %v401_v9 = vld [vmem:[%s3915_s3 + $0x48] sm:$0xf]  ;;  %v402_v10 = vld [vmem:[%s3915_s3 + $0x4c] sm:$0xf] }
   0x4   :  { %2797 = vmatprep.subr.bf16.mxu0 %v2876_v2  ;;  %v2877_v6 = vld [vmem:[%s3914_s2] sm:$0xff]   ;;  %v385_v11 = vld [vmem:[%s3915_s3 + $0x8] sm:$0xf]  ;;  %v386_v12 = vld [vmem:[%s3915_s3 + $0xc] sm:$0xf] }
   0x5   :  { %2798 = vmatpush3.bf16.msra.mxu0 %v2876_v2  ;;  %2799 = vmatprep.mubr.msk.bf16.mxu0 %vm157_vm0, %v2877_v6  ;;  %v2880_v13 = vld [vmem:[%s3914_s2 + $0x18] sm:$0xff]   ;;  %v2881_v14 = vld [vmem:[%s3914_s2 + $0x20] sm:$0xff]   ;;  %v403_v15 = vld [vmem:[%s3915_s3 + $0x50] sm:$0xf] }
   0x6   :  { %621 = vperm.xlu0 %2862, %v400_v4   ;;  %v404_v16 = vld [vmem:[%s3915_s3 + $0x54] sm:$0xf]  ;;  %v387_v17 = vld [vmem:[%s3915_s3 + $0x10] sm:$0xf]  ;;  %v2882_v19 = vld [vmem:[%s3914_s2 + $0x28] sm:$0xff]  }
   0x7   :  { %429 = vperm.xlu1 %2863, %v384_v5   ;;  %v388_v18 = vld [vmem:[%s3915_s3 + $0x14] sm:$0xf]  ;;  %v405_v21 = vld [vmem:[%s3915_s3 + $0x58] sm:$0xf]  ;;  %v406_v22 = vld [vmem:[%s3915_s3 + $0x5c] sm:$0xf] }
   0x8   :  { %2800 = vmatmul.mubr.msk.bf16.vlgmr.msra.gmra.mrb[0].mxu0 %vm157_vm0, %v2878_v7  ;;  %v2883_v20 = vld [vmem:[%s3914_s2 + $0x30] sm:$0xff]   ;;  %v389_v23 = vld [vmem:[%s3915_s3 + $0x18] sm:$0xf]  ;;  %v390_v24 = vld [vmem:[%s3915_s3 + $0x1c] sm:$0xf] }
   0x9   :  { %2803 = vmatprep.mubr.msk.bf16.mxu0 %vm157_vm0, %v2879_v8  ;;  %v2884_v25 = vld [vmem:[%s3914_s2 + $0x38] sm:$0xff]   ;;  %v2885_v26 = vld [vmem:[%s3914_s2 + $0x40] sm:$0xff]   ;;  %v2886_v31 = vld [vmem:[%s3914_s2 + $0x48] sm:$0xff]  }
   0xa   :  { %633 = vperm.xlu0 %2862, %v401_v9   ;;  %v407_v27 = vld [vmem:[%s3915_s3 + $0x60] sm:$0xf]  ;;  %v408_v28 = vld [vmem:[%s3915_s3 + $0x64] sm:$0xf]  ;;  %v2887_v32 = vld [vmem:[%s3914_s2 + $0x50] sm:$0xff]  }
   0xb   :  { %645 = vperm.xlu1 %2863, %v402_v10   ;;  %v391_v29 = vld [vmem:[%s3915_s3 + $0x20] sm:$0xf]  ;;  %v392_v30 = vld [vmem:[%s3915_s3 + $0x24] sm:$0xf]  ;;  %v409_v33 = vld [vmem:[%s3915_s3 + $0x68] sm:$0xf] }
   0xc   :  { %v410_v34 = vld [vmem:[%s3915_s3 + $0x6c] sm:$0xf]  ;;  %v393_v35 = vld [vmem:[%s3915_s3 + $0x28] sm:$0xf]  ;;  %v2888_v37 = vld [vmem:[%s3914_s2 + $0x58] sm:$0xff]  }
   0xd   :  { %v394_v36 = vld [vmem:[%s3915_s3 + $0x2c] sm:$0xf]  ;;  %v2889_v38 = vld [vmem:[%s3914_s2 + $0x60] sm:$0xff]   ;;  %v411_v39 = vld [vmem:[%s3915_s3 + $0x70] sm:$0xf] }
   0xe   :  { %441 = vperm.xlu0 %2862, %v385_v11   ;;  %v412_v40 = vld [vmem:[%s3915_s3 + $0x74] sm:$0xf]  ;;  %v395_v41 = vld [vmem:[%s3915_s3 + $0x30] sm:$0xf]  ;;  %v2890_v43 = vld [vmem:[%s3914_s2 + $0x68] sm:$0xff]  }
   0xf   :  { %453 = vperm.xlu1 %2863, %v386_v12   ;;  %v396_v42 = vld [vmem:[%s3915_s3 + $0x34] sm:$0xf]  ;;  %v413_v45 = vld [vmem:[%s3915_s3 + $0x78] sm:$0xf]  ;;  %v414_v46 = vld [vmem:[%s3915_s3 + $0x7c] sm:$0xf] }
  0x10   :  { %2804 = vmatmul.mubr.msk.bf16.gmra.mrb[4].mxu0 %vm157_vm0, %v2880_v13  ;;  %v2891_v44 = vld [vmem:[%s3914_s2 + $0x70] sm:$0xff]   ;;  %v397_v47 = vld [vmem:[%s3915_s3 + $0x38] sm:$0xf]  ;;  %v398_v48 = vld [vmem:[%s3915_s3 + $0x3c] sm:$0xf] }
  0x11   :  { %2807 = vmatprep.mubr.msk.bf16.mxu0 %vm157_vm0, %v2881_v14  ;;  %v2892_v49 = vld [vmem:[%s3914_s2 + $0x78] sm:$0xff]  }
  0x12   :  { %657 = vperm.xlu0 %2862, %v403_v15  }
  0x13   :  { %669 = vperm.xlu1 %2863, %v404_v16  }
  0x16   :  { %465 = vperm.xlu0 %2862, %v387_v17  }
  0x17   :  { %477 = vperm.xlu1 %2863, %v388_v18  }
  0x18   :  { %2808 = vmatmul.mubr.msk.bf16.gmra.mrb[8].mxu0 %vm157_vm0, %v2882_v19 }
  0x19   :  { %2811 = vmatprep.mubr.msk.bf16.mxu0 %vm157_vm0, %v2883_v20 }
  0x1a   :  { %681 = vperm.xlu0 %2862, %v405_v21  }
  0x1b   :  { %693 = vperm.xlu1 %2863, %v406_v22  }
  0x1e   :  { %489 = vperm.xlu0 %2862, %v389_v23  }
  0x1f   :  { %501 = vperm.xlu1 %2863, %v390_v24  }
  0x20   :  { %2812 = vmatmul.mubr.msk.bf16.gmra.mrb[12].mxu0 %vm157_vm0, %v2884_v25 }
  0x21   :  { %2815 = vmatprep.mubr.msk.bf16.mxu0 %vm157_vm0, %v2885_v26 }
  0x22   :  { %705 = vperm.xlu0 %2862, %v407_v27  }
  0x23   :  { %717 = vperm.xlu1 %2863, %v408_v28  }
  0x26   :  { %513 = vperm.xlu0 %2862, %v391_v29  }
  0x27   :  { %525 = vperm.xlu1 %2863, %v392_v30  }
  0x28   :  { %2816 = vmatmul.mubr.msk.bf16.gmra.mrb[16].mxu0 %vm157_vm0, %v2886_v31 }
  0x29   :  { %2819 = vmatprep.mubr.msk.bf16.mxu0 %vm157_vm0, %v2887_v32 }
  0x2a   :  { %729 = vperm.xlu0 %2862, %v409_v33  }
  0x2b   :  { %741 = vperm.xlu1 %2863, %v410_v34  }
  0x2e   :  { %537 = vperm.xlu0 %2862, %v393_v35  }
  0x2f   :  { %549 = vperm.xlu1 %2863, %v394_v36  }
  0x30   :  { %2820 = vmatmul.mubr.msk.bf16.gmra.mrb[20].mxu0 %vm157_vm0, %v2888_v37 }
  0x31   :  { %2823 = vmatprep.mubr.msk.bf16.mxu0 %vm157_vm0, %v2889_v38 }
  0x32   :  { %753 = vperm.xlu0 %2862, %v411_v39  }
  0x33   :  { %765 = vperm.xlu1 %2863, %v412_v40  }
  0x36   :  { %561 = vperm.xlu0 %2862, %v395_v41  }
  0x37   :  { %573 = vperm.xlu1 %2863, %v396_v42  }
  0x38   :  { %2824 = vmatmul.mubr.msk.bf16.gmra.mrb[24].mxu0 %vm157_vm0, %v2890_v43 }
  0x39   :  { %2827 = vmatprep.mubr.msk.bf16.mxu0 %vm157_vm0, %v2891_v44 }
  0x3a   :  { %777 = vperm.xlu0 %2862, %v413_v45  }
  0x3b   :  { %789 = vperm.xlu1 %2863, %v414_v46  }
  0x3c   :  { %15 = vsyncpa [#allocation3], 0  ;;  %v1312_v50 = vld [vmem:[%s3917_s5 + $0x40] sm:$0xf]  ;;  %v1313_v51 = vld [vmem:[%s3917_s5 + $0x44] sm:$0xf] }
  0x3d   :  { %v1296_v52 = vld [vmem:[%s3917_s5] sm:$0xf]  ;;  %v1297_v53 = vld [vmem:[%s3917_s5 + $0x4] sm:$0xf]  ;;  %v1314_v54 = vld [vmem:[%s3917_s5 + $0x48] sm:$0xf] }
  0x3e   :  { %585 = vperm.xlu0 %2862, %v397_v47   ;;  %v1315_v55 = vld [vmem:[%s3917_s5 + $0x4c] sm:$0xf]  ;;  %v1298_v56 = vld [vmem:[%s3917_s5 + $0x8] sm:$0xf]  ;;  %v1316_v58 = vld [vmem:[%s3917_s5 + $0x50] sm:$0xf] }
  0x3f   :  { %597 = vperm.xlu1 %2863, %v398_v48   ;;  %v1299_v57 = vld [vmem:[%s3917_s5 + $0xc] sm:$0xf]  ;;  %v1317_v59 = vld [vmem:[%s3917_s5 + $0x54] sm:$0xf]  ;;  %v1300_v60 = vld [vmem:[%s3917_s5 + $0x10] sm:$0xf] }
  0x40   :  { %2828 = vmatmul.mubr.msk.bf16.gmra.mrb[28].mxu0 %vm157_vm0, %v2892_v49  ;;  %v1301_v61 = vld [vmem:[%s3917_s5 + $0x14] sm:$0xf]  ;;  %v1318_v62 = vld [vmem:[%s3917_s5 + $0x58] sm:$0xf]  ;;  %v1319_v63 = vld [vmem:[%s3917_s5 + $0x5c] sm:$0xf] }
  0x41   :  { %v1302_v0 = vld [vmem:[%s3917_s5 + $0x18] sm:$0xf]  ;;  %v1303_v1 = vld [vmem:[%s3917_s5 + $0x1c] sm:$0xf]  ;;  %v1320_v2 = vld [vmem:[%s3917_s5 + $0x60] sm:$0xf] }
  0x42   :  { %1522 = vperm.xlu0 %2862, %v1312_v50   ;;  %v1321_v4 = vld [vmem:[%s3917_s5 + $0x64] sm:$0xf]  ;;  %v1304_v5 = vld [vmem:[%s3917_s5 + $0x20] sm:$0xf]  ;;  %v1322_v7 = vld [vmem:[%s3917_s5 + $0x68] sm:$0xf] }
  0x43   :  { %1534 = vperm.xlu1 %2863, %v1313_v51   ;;  %v1305_v6 = vld [vmem:[%s3917_s5 + $0x24] sm:$0xf]  ;;  %v1323_v8 = vld [vmem:[%s3917_s5 + $0x6c] sm:$0xf]  ;;  %v1306_v9 = vld [vmem:[%s3917_s5 + $0x28] sm:$0xf] }
  0x44   :  { %v1307_v10 = vld [vmem:[%s3917_s5 + $0x2c] sm:$0xf]  ;;  %v1324_v11 = vld [vmem:[%s3917_s5 + $0x70] sm:$0xf]  ;;  %v1325_v12 = vld [vmem:[%s3917_s5 + $0x74] sm:$0xf] }
  0x45   :  { %v1308_v13 = vld [vmem:[%s3917_s5 + $0x30] sm:$0xf]  ;;  %v1309_v14 = vld [vmem:[%s3917_s5 + $0x34] sm:$0xf]  ;;  %v1326_v15 = vld [vmem:[%s3917_s5 + $0x78] sm:$0xf] }
  0x46   :  { %1330 = vperm.xlu0 %2862, %v1296_v52   ;;  %v1327_v16 = vld [vmem:[%s3917_s5 + $0x7c] sm:$0xf]  ;;  %v1310_v17 = vld [vmem:[%s3917_s5 + $0x38] sm:$0xf]  ;;  %v2041_v19 = vld [vmem:[%s3919_s7] sm:$0xf] }
  0x47   :  { %1342 = vperm.xlu1 %2863, %v1297_v53   ;;  %v1311_v18 = vld [vmem:[%s3917_s5 + $0x3c] sm:$0xf]  ;;  %v2042_v20 = vld [vmem:[%s3919_s7 + $0x4] sm:$0xf]  ;;  %v2043_v21 = vld [vmem:[%s3919_s7 + $0x8] sm:$0xf] }
  0x48   :  { %v2044_v22 = vld [vmem:[%s3919_s7 + $0xc] sm:$0xf]  ;;  %v2045_v23 = vld [vmem:[%s3919_s7 + $0x10] sm:$0xf]  ;;  %v2046_v24 = vld [vmem:[%s3919_s7 + $0x14] sm:$0xf] }
  0x49   :  { %v2047_v25 = vld [vmem:[%s3919_s7 + $0x18] sm:$0xf]  ;;  %v2048_v26 = vld [vmem:[%s3919_s7 + $0x1c] sm:$0xf]  ;;  %v2049_v27 = vld [vmem:[%s3919_s7 + $0x20] sm:$0xf] }
  0x4a   :  { %1546 = vperm.xlu0 %2862, %v1314_v54   ;;  %v2050_v28 = vld [vmem:[%s3919_s7 + $0x24] sm:$0xf]  ;;  %v2051_v29 = vld [vmem:[%s3919_s7 + $0x28] sm:$0xf]  ;;  %v2052_v30 = vld [vmem:[%s3919_s7 + $0x2c] sm:$0xf] }
  0x4b   :  { %1558 = vperm.xlu1 %2863, %v1315_v55   ;;  %v2053_v31 = vld [vmem:[%s3919_s7 + $0x30] sm:$0xf]  ;;  %v2054_v32 = vld [vmem:[%s3919_s7 + $0x34] sm:$0xf]  ;;  %v2055_v33 = vld [vmem:[%s3919_s7 + $0x38] sm:$0xf] }
  0x4c   :  { %v2056_v34 = vld [vmem:[%s3919_s7 + $0x3c] sm:$0xf]  ;;  %v2895_v35 = vld [vmem:[%s3916_s4 + $0x4] ss:$8 sps:$4 sm:$0xff]   ;;  %vm2997_vm1 = vmmov 0   ;;  %s3004_s29 = smov [#allocation2]  }
  0x4d   :  { %1151 = vmatprep.mubr.bf16.mxu1 %v2895_v35  ;;  %s2463_s7 = sshll.u32 %s3004_s29, 4  ;;  %s2464_s7 = int_to_ptr.vmem [resolvable:$true] %s2463_s7 }
  0x4e   :  { %1354 = vperm.xlu0 %2862, %v1298_v56   ;;  %s2970_s3 = scalar_lea.vmem %s2464_s7, 16  ;;  %s2974_s30 = scalar_lea.vmem %s2464_s7, 32 }
  0x4f   :  { %1366 = vperm.xlu1 %2863, %v1299_v57   ;;  %p2971_p0 = scmp.ne.s32.totalorder %s2464_s7, %s2970_s3  ;;  %p2975_p1 = scmp.lt.s32.totalorder %s2464_s7, %s2464_s7 }
  0x50   :  { %p2976_p2 = scmp.lt.s32.totalorder %s2974_s30, %s2970_s3 }
  0x52   :  { %1570 = vperm.xlu0 %2862, %v1316_v58   ;;  %p2977_p3 = por %p2976_p2, %p2975_p1 }
  0x53   :  { %1582 = vperm.xlu1 %2863, %v1317_v59  }
  0x54   :  { %p2978_p4 = pnand %p2977_p3, %p2971_p0 }
  0x56   :  { %1378 = vperm.xlu0 %2862, %v1300_v60  }
  0x57   :  { %1390 = vperm.xlu1 %2863, %v1301_v61  }
  0x5a   :  { %1594 = vperm.xlu0 %2862, %v1318_v62  }
  0x5b   :  { %1606 = vperm.xlu1 %2863, %v1319_v63  }
  0x5e   :  { %1402 = vperm.xlu0 %2862, %v1302_v0  }
  0x5f   :  { %1414 = vperm.xlu1 %2863, %v1303_v1  }
  0x62   :  { %1618 = vperm.xlu0 %2862, %v1320_v2  }
  0x63   :  { %1630 = vperm.xlu1 %2863, %v1321_v4  }
  0x66   :  { %1426 = vperm.xlu0 %2862, %v1304_v5   ;;  %v2995_v5 = vmov 839922192  }
  0x67   :  { %1438 = vperm.xlu1 %2863, %v1305_v6   ;;  %v421_v6 = vunpack.c.l.s4 %v2995_v5 }
  0x6a   :  { %1642 = vperm.xlu0 %2862, %v1322_v7   ;;  %v423_v7 = vlaneseq }
  0x6b   :  { %1654 = vperm.xlu1 %2863, %v1323_v8  }
  0x6e   :  { %1450 = vperm.xlu0 %2862, %v1306_v9  }
  0x6f   :  { %1462 = vperm.xlu1 %2863, %v1307_v10  }
  0x72   :  { %1666 = vperm.xlu0 %2862, %v1324_v11  }
  0x73   :  { %1678 = vperm.xlu1 %2863, %v1325_v12   ;;  %v422_v12 = vunpack.c.0.s8 %v421_v6 }
  0x76   :  { %1474 = vperm.xlu0 %2862, %v1308_v13   ;;  %v424_v13 = vshrl.u32 %v423_v7, 7 }
  0x77   :  { %1486 = vperm.xlu1 %2863, %v1309_v14  }
  0x7a   :  { %1690 = vperm.xlu0 %2862, %v1326_v15  }
  0x7b   :  { %1702 = vperm.xlu1 %2863, %v1327_v16  }
  0x7e   :  { %1498 = vperm.xlu0 %2862, %v1310_v17  }
  0x7f   :  { %1510 = vperm.xlu1 %2863, %v1311_v18   ;;  %v3442_v18 = vsub.s32 %v422_v12, %v424_v13 }
  0x81   :  { %v3372_v36 = vpop.permute.xlu0 %609 }
  0x82   :  { %2059 = vperm.xlu0 %2862, %v2041_v19   ;;  %v418_v37 = vpop.permute.xlu1 %417 }
  0x83   :  { %2071 = vperm.xlu1 %2863, %v2042_v20  }
  0x85   :  { %v3374_v38 = vpop.permute.xlu0 %621 }
  0x86   :  { %2083 = vperm.xlu0 %2862, %v2043_v21   ;;  %v430_v39 = vpop.permute.xlu1 %429 }
  0x87   :  { %2095 = vperm.xlu1 %2863, %v2044_v22  }
  0x89   :  { %v3376_v40 = vpop.permute.xlu0 %633 }
  0x8a   :  { %2107 = vperm.xlu0 %2862, %v2045_v23   ;;  %v3378_v41 = vpop.permute.xlu1 %645 }
  0x8b   :  { %2119 = vperm.xlu1 %2863, %v2046_v24  }
  0x8d   :  { %v3380_v42 = vpop.permute.xlu0 %441 }
  0x8e   :  { %2131 = vperm.xlu0 %2862, %v2047_v25   ;;  %v3382_v43 = vpop.permute.xlu1 %453  ;;  %v426_v25 = vrot.slane %v418_v37, %v3442_v18 }
  0x8f   :  { %2143 = vperm.xlu1 %2863, %v2048_v26   ;;  %v438_v26 = vrot.slane %v430_v39, %v3442_v18  ;;  %v462_v35 = vrot.slane %v3382_v43, %v3442_v18 }
  0x91   :  { %v3384_v44 = vpop.permute.xlu0 %657 }
  0x92   :  { %2155 = vperm.xlu0 %2862, %v2049_v27   ;;  %v3386_v45 = vpop.permute.xlu1 %669 }
  0x93   :  { %2167 = vperm.xlu1 %2863, %v2050_v28   ;;  %v618_v28 = vrot.slane %v3372_v36, %v3442_v18 }
  0x95   :  { %v3388_v46 = vpop.permute.xlu0 %465 }
  0x96   :  { %2179 = vperm.xlu0 %2862, %v2051_v29   ;;  %v3390_v47 = vpop.permute.xlu1 %477  ;;  %v630_v29 = vrot.slane %v3374_v38, %v3442_v18  ;;  %v474_v43 = vrot.slane %v3388_v46, %v3442_v18 }
  0x97   :  { %2191 = vperm.xlu1 %2863, %v2052_v30   ;;  %v642_v30 = vrot.slane %v3376_v40, %v3442_v18  ;;  %v486_v13 = vrot.slane %v3390_v47, %v3442_v18 }
  0x99   :  { %v3398_v52 = vpop.permute.xlu0 %681 }
  0x9a   :  { %2203 = vperm.xlu0 %2862, %v2053_v31   ;;  %v3400_v54 = vpop.permute.xlu1 %693  ;;  %v654_v31 = vrot.slane %v3378_v41, %v3442_v18 }
  0x9b   :  { %2215 = vperm.xlu1 %2863, %v2054_v32  }
  0x9c   :  { %v2513_v40 = vcombine.low %v642_v30, %v654_v31 }
  0x9d   :  { %v3406_v58 = vpop.permute.xlu0 %489 }
  0x9e   :  { %2227 = vperm.xlu0 %2862, %v2055_v33   ;;  %v3410_v60 = vpop.permute.xlu1 %501  ;;  %v2504_v33 = vcombine.low %v426_v25, %v438_v26 }
  0x9f   :  { %2239 = vperm.xlu1 %2863, %v2056_v34   ;;  %v450_v34 = vrot.slane %v3380_v42, %v3442_v18  ;;  %v666_v42 = vrot.slane %v3384_v44, %v3442_v18 }
  0xa1   :  { %v3418_v0 = vpop.permute.xlu0 %705  ;;  %v2505_v6 = vcombine.low %v450_v34, %v462_v35 }
  0xa2   :  { %v3422_v2 = vpop.permute.xlu1 %717 }
  0xa5   :  { %v3434_v14 = vpop.permute.xlu0 %513 }
  0xa6   :  { %v3436_v15 = vpop.permute.xlu1 %525 }
  0xa9   :  { %v3448_v21 = vpop.permute.xlu0 %729 }
  0xaa   :  { %v3452_v23 = vpop.permute.xlu1 %741 }
  0xad   :  { %v3470_v37 = vpop.permute.xlu0 %537 }
  0xae   :  { %v3472_v39 = vpop.permute.xlu1 %549 }
  0xb1   :  { %v3480_v25 = vpop.permute.xlu0 %753 }
  0xdb   :  { %v3392_v48 = vpop.f32.mrb[0].mxu0 }
  0xdc   :  { %v240_v49 = vpop.f32.mrb[1].mxu0 }
  0xdd   :  { %v3394_v50 = vpop.f32.mrb[2].mxu0 }
  0xde   :  { %v368_v51 = vpack.c.bf16 %v3394_v50, %v3392_v48  ;;  %v243_v53 = vpop.f32.mrb[3].mxu0 }
  0xdf   :  { %v367_v55 = vpack.c.bf16 %v243_v53, %v240_v49  ;;  %v2512_v53 = vcombine.low %v618_v28, %v630_v29  ;;  %v702_v28 = vrot.slane %v3400_v54, %v3442_v18  ;;  %v3488_v29 = vpop.permute.xlu1 %765  ;;  %v498_v54 = vrot.slane %v3406_v58, %v3442_v18 }
  0xe0   :  { %v896_v47 = vadd.bf16 %v2505_v6, %v368_v51  ;;  %v534_v6 = vrot.slane %v3436_v15, %v3442_v18 }
  0xe1   :  { %v895_v41 = vadd.bf16 %v2504_v33, %v367_v55  ;;  %v690_v55 = vrot.slane %v3398_v52, %v3442_v18  ;;  %v2506_v52 = vcombine.low %v474_v43, %v486_v13  ;;  %v510_v33 = vrot.slane %v3410_v60, %v3442_v18 }
  0xe2   :  { %v912_v51 = vmax.bf16 %v2994_v3, %v896_v47  ;;  %v714_v60 = vrot.slane %v3418_v0, %v3442_v18 }
  0xe3   :  { %v3402_v56 = vpop.f32.mrb[4].mxu0  ;;  %v911_v31 = vmax.bf16 %v2994_v3, %v895_v41  ;;  %v2507_v58 = vcombine.low %v498_v54, %v510_v33 }
  0xe4   :  { %v3404_v57 = vpop.f32.mrb[5].mxu0 }
  0xe5   :  { %v3408_v59 = vpop.f32.mrb[6].mxu0 }
  0xe6   :  { %v370_v61 = vpack.c.bf16 %v3408_v59, %v3402_v56  ;;  %v3414_v62 = vpop.f32.mrb[7].mxu0 }
  0xe7   :  { %v369_v63 = vpack.c.bf16 %v3414_v62, %v3404_v57  ;;  %v726_v57 = vrot.slane %v3422_v2, %v3442_v18  ;;  %v738_v62 = vrot.slane %v3448_v21, %v3442_v18  ;;  %v546_v21 = vrot.slane %v3470_v37, %v3442_v18 }
  0xe9   :  { %v897_v50 = vadd.bf16 %v2506_v52, %v369_v63  ;;  %v750_v63 = vrot.slane %v3452_v23, %v3442_v18  ;;  %v558_v23 = vrot.slane %v3472_v39, %v3442_v18  ;;  %v762_v39 = vrot.slane %v3480_v25, %v3442_v18 }
  0xeb   :  { %v3420_v1 = vpop.f32.mrb[8].mxu0  ;;  %v913_v15 = vmax.bf16 %v2994_v3, %v897_v50  ;;  %v2509_v37 = vcombine.low %v546_v21, %v558_v23  ;;  %v2919_v21 = vld [vmem:[%s3916_s4 + $0x80] ss:$8 sps:$4 sm:$0xff]   ;;  %v2920_v23 = vld [vmem:[%s3916_s4 + $0x94] ss:$8 sps:$4 sm:$0xff]  }
  0xec   :  { %v3424_v4 = vpop.f32.mrb[9].mxu0 }
  0xed   :  { %v3426_v8 = vpop.f32.mrb[10].mxu0 }
  0xee   :  { %v372_v9 = vpack.c.bf16 %v3426_v8, %v3420_v1  ;;  %v3430_v10 = vpop.f32.mrb[11].mxu0 }
  0xef   :  { %v371_v11 = vpack.c.bf16 %v3430_v10, %v3424_v4 }
  0xf0   :  { %v900_v25 = vadd.bf16 %v2509_v37, %v372_v9  ;;  %v2937_v37 = vld [vmem:[%s3916_s4 + $0xe0] ss:$8 sps:$4 sm:$0xff]  }
  0xf2   :  { %v916_v9 = vmax.bf16 %v2994_v3, %v900_v25 }
  0xf3   :  { %v3438_v16 = vpop.f32.mrb[12].mxu0 }
  0xf4   :  { %v3440_v17 = vpop.f32.mrb[13].mxu0 }
  0xf5   :  { %v3444_v19 = vpop.f32.mrb[14].mxu0 }
  0xf6   :  { %v374_v20 = vpack.c.bf16 %v3444_v19, %v3438_v16  ;;  %v3450_v22 = vpop.f32.mrb[15].mxu0  ;;  %v2898_v16 = vld [vmem:[%s3916_s4 + $0x10] ss:$8 sps:$4 sm:$0xff]   ;;  %v2899_v19 = vld [vmem:[%s3916_s4 + $0x24] ss:$8 sps:$4 sm:$0xff]  }
  0xf7   :  { %v373_v24 = vpack.c.bf16 %v3450_v22, %v3440_v17  ;;  %v2893_v22 = vld [vmem:[%s3916_s4] ss:$8 sps:$4 sm:$0xff]  }
  0xfb   :  { %v2817_v27 = vpop.f32.mrb[16].mxu0 }
  0xfc   :  { %v304_v32 = vpop.f32.mrb[17].mxu0 }
  0xfd   :  { %v2818_v36 = vpop.f32.mrb[18].mxu0 }
  0xfe   :  { %v376_v38 = vpack.c.bf16 %v2818_v36, %v2817_v27  ;;  %v307_v49 = vpop.f32.mrb[19].mxu0  ;;  %v678_v27 = vrot.slane %v3386_v45, %v3442_v18  ;;  %v2515_v36 = vcombine.low %v690_v55, %v702_v28 }
  0xff   :  { %v375_v5 = vpack.c.bf16 %v307_v49, %v304_v32  ;;  %v574_v49 = vpop.permute.xlu1 %573 }
 0x100   :  { %v904_v7 = vadd.bf16 %v2513_v40, %v376_v38  ;;  %v2514_v35 = vcombine.low %v666_v42, %v678_v27  ;;  %v562_v38 = vpop.permute.xlu0 %561  ;;  %v2517_v27 = vcombine.low %v738_v62, %v750_v63  ;;  %v2904_v62 = vld [vmem:[%s3916_s4 + $0x30] ss:$8 sps:$4 sm:$0xff]   ;;  %v2905_v63 = vld [vmem:[%s3916_s4 + $0x44] ss:$8 sps:$4 sm:$0xff]  }
 0x101   :  { %v903_v12 = vadd.bf16 %v2512_v53, %v375_v5  ;;  %v522_v5 = vrot.slane %v3434_v14, %v3442_v18  ;;  %v898_v14 = vadd.bf16 %v2507_v58, %v370_v61  ;;  %v570_v47 = vrot.slane %v562_v38, %v3442_v18 }
 0x102   :  { %v920_v45 = vmax.bf16 %v2994_v3, %v904_v7 }
 0x103   :  { %v2821_v26 = vpop.f32.mrb[20].mxu0  ;;  %v919_v46 = vmax.bf16 %v2994_v3, %v903_v12  ;;  %v2508_v43 = vcombine.low %v522_v5, %v534_v6  ;;  %v790_v59 = vpop.permute.xlu1 %789  ;;  %v914_v28 = vmax.bf16 %v2994_v3, %v898_v14  ;;  %v2910_v14 = vld [vmem:[%s3916_s4 + $0x50] ss:$8 sps:$4 sm:$0xff]  }
 0x104   :  { %v320_v44 = vpop.f32.mrb[21].mxu0  ;;  %v778_v56 = vpop.permute.xlu0 %777  ;;  %v798_v10 = vrot.slane %v790_v59, %v3442_v18  ;;  %v2928_v59 = vld [vmem:[%s3916_s4 + $0xb0] ss:$8 sps:$4 sm:$0xff]  }
 0x105   :  { %v2822_v30 = vpop.f32.mrb[22].mxu0  ;;  %2612 = vmatprep.subr.bf16.mxu1 %v919_v46  ;;  %v899_v55 = vadd.bf16 %v2508_v43, %v371_v11  ;;  %v786_v4 = vrot.slane %v778_v56, %v3442_v18  ;;  %v2917_v43 = vld [vmem:[%s3916_s4 + $0x84] ss:$8 sps:$4 sm:$0xff]   ;;  %v2926_v56 = vld [vmem:[%s3916_s4 + $0xb4] ss:$8 sps:$4 sm:$0xff]  }
 0x106   :  { %v378_v32 = vpack.c.bf16 %v2822_v30, %v2821_v26  ;;  %v323_v34 = vpop.f32.mrb[23].mxu0  ;;  %2613 = vmatpush3.bf16.msra.mxu1 %v911_v31  ;;  %v2516_v26 = vcombine.low %v714_v60, %v726_v57  ;;  %v582_v30 = vrot.slane %v574_v49, %v3442_v18  ;;  %v2902_v57 = vld [vmem:[%s3916_s4 + $0x34] ss:$8 sps:$4 sm:$0xff]  }
 0x107   :  { %v377_v48 = vpack.c.bf16 %v323_v34, %v320_v44  ;;  %2614 = vmatprep.subr.bf16.mxu1 %v920_v45  ;;  %v915_v54 = vmax.bf16 %v2994_v3, %v899_v55  ;;  %v598_v34 = vpop.permute.xlu1 %597  ;;  %v2519_v49 = vcombine.low %v786_v4, %v798_v10  ;;  %v2931_v55 = vld [vmem:[%s3916_s4 + $0xc0] ss:$8 sps:$4 sm:$0xff]  }
 0x108   :  { %v906_v53 = vadd.bf16 %v2515_v36, %v378_v32  ;;  %v774_v32 = vrot.slane %v3488_v29, %v3442_v18  ;;  %v586_v33 = vpop.permute.xlu0 %585  ;;  %v2510_v36 = vcombine.low %v570_v47, %v582_v30  ;;  %v606_v50 = vrot.slane %v598_v34, %v3442_v18  ;;  %v2940_v47 = vld [vmem:[%s3916_s4 + $0xf0] ss:$8 sps:$4 sm:$0xff]  }
 0x109   :  { %v905_v40 = vadd.bf16 %v2514_v35, %v377_v48  ;;  %v594_v48 = vrot.slane %v586_v33, %v3442_v18 }
 0x10a   :  { %2615 = vmatpush3.bf16.msra.mxu1 %v912_v51  ;;  %v922_v2 = vmax.bf16 %v2994_v3, %v906_v53  ;;  %v2518_v38 = vcombine.low %v762_v39, %v774_v32  ;;  %v901_v8 = vadd.bf16 %v2510_v36, %v373_v24  ;;  %v2896_v24 = vld [vmem:[%s3916_s4 + $0x14] ss:$8 sps:$4 sm:$0xff]  }
 0x10b   :  { %v2825_v41 = vpop.f32.mrb[24].mxu0  ;;  %v921_v0 = vmax.bf16 %v2994_v3, %v905_v40  ;;  %v2511_v58 = vcombine.low %v594_v48, %v606_v50  ;;  %v2938_v39 = vld [vmem:[%s3916_s4 + $0xf4] ss:$8 sps:$4 sm:$0xff]  }
 0x10c   :  { %v336_v7 = vpop.f32.mrb[25].mxu0  ;;  %v917_v6 = vmax.bf16 %v2994_v3, %v901_v8 }
 0x10d   :  { %v2826_v12 = vpop.f32.mrb[26].mxu0  ;;  %2616 = vmatprep.subr.bf16.mxu1 %v921_v0  ;;  %v902_v5 = vadd.bf16 %v2511_v58, %v374_v20  ;;  %v2901_v20 = vld [vmem:[%s3916_s4 + $0x20] ss:$8 sps:$4 sm:$0xff]   ;;  %v2908_v0 = vld [vmem:[%s3916_s4 + $0x54] ss:$8 sps:$4 sm:$0xff]  }
 0x10e   :  { %v380_v42 = vpack.c.bf16 %v2826_v12, %v2825_v41  ;;  %v339_v13 = vpop.f32.mrb[27].mxu0  ;;  %2617 = vmatpush3.bf16.msra.mxu1 %v913_v15  ;;  %v2911_v12 = vld [vmem:[%s3916_s4 + $0x64] ss:$8 sps:$4 sm:$0xff]   ;;  %v2913_v15 = vld [vmem:[%s3916_s4 + $0x60] ss:$8 sps:$4 sm:$0xff]  }
 0x10f   :  { %v379_v61 = vpack.c.bf16 %v339_v13, %v336_v7  ;;  %2618 = vmatprep.subr.bf16.mxu1 %v922_v2  ;;  %v918_v17 = vmax.bf16 %v2994_v3, %v902_v5  ;;  %v2907_v7 = vld [vmem:[%s3916_s4 + $0x40] ss:$8 sps:$4 sm:$0xff]   ;;  %v2916_v2 = vld [vmem:[%s3916_s4 + $0x70] ss:$8 sps:$4 sm:$0xff]  }
 0x110   :  { %v908_v44 = vadd.bf16 %v2517_v27, %v380_v42  ;;  %v2914_v42 = vld [vmem:[%s3916_s4 + $0x74] ss:$8 sps:$4 sm:$0xff]   ;;  %v2922_v13 = vld [vmem:[%s3916_s4 + $0x90] ss:$8 sps:$4 sm:$0xff]   ;;  %v2925_v27 = vld [vmem:[%s3916_s4 + $0xa0] ss:$8 sps:$4 sm:$0xff]  }
 0x111   :  { %v907_v46 = vadd.bf16 %v2516_v26, %v379_v61  ;;  %v2923_v26 = vld [vmem:[%s3916_s4 + $0xa4] ss:$8 sps:$4 sm:$0xff]  }
 0x112   :  { %2619 = vmatpush3.bf16.msra.mxu1 %v914_v28  ;;  %v924_v29 = vmax.bf16 %v2994_v3, %v908_v44  ;;  %v2929_v61 = vld [vmem:[%s3916_s4 + $0xc4] ss:$8 sps:$4 sm:$0xff]   ;;  %v2932_v28 = vld [vmem:[%s3916_s4 + $0xd4] ss:$8 sps:$4 sm:$0xff]   ;;  %v2934_v44 = vld [vmem:[%s3916_s4 + $0xd0] ss:$8 sps:$4 sm:$0xff]  }
 0x113   :  { %v2829_v31 = vpop.f32.mrb[28].mxu0  ;;  %v923_v45 = vmax.bf16 %v2994_v3, %v907_v46  ;;  %v2935_v46 = vld [vmem:[%s3916_s4 + $0xe4] ss:$8 sps:$4 sm:$0xff]  }
 0x114   :  { %v352_v11 = vpop.f32.mrb[29].mxu0 }
 0x115   :  { %v2830_v52 = vpop.f32.mrb[30].mxu0  ;;  %2620 = vmatprep.subr.bf16.mxu1 %v923_v45  ;;  %v2943_v45 = vld [vmem:[%s3918_s6 + $0x4] ss:$8 sps:$4 sm:$0xff]  }
 0x116   :  { %v382_v35 = vpack.c.bf16 %v2830_v52, %v2829_v31  ;;  %v355_v51 = vpop.f32.mrb[31].mxu0  ;;  %2621 = vmatpush3.bf16.msra.mxu1 %v915_v54  ;;  %1968 = vmatprep.mubr.bf16.mxu0 %v2943_v45 }
 0x117   :  { %v381_v1 = vpack.c.bf16 %v355_v51, %v352_v11  ;;  %2622 = vmatprep.subr.bf16.mxu1 %v924_v29 }
 0x118   :  { %v910_v53 = vadd.bf16 %v2519_v49, %v382_v35 }
 0x119   :  { %v909_v40 = vadd.bf16 %v2518_v38, %v381_v1 }
 0x11a   :  { %2623 = vmatpush3.bf16.msra.mxu1 %v916_v9  ;;  %v926_v41 = vmax.bf16 %v2994_v3, %v910_v53 }
 0x11b   :  { %v925_v60 = vmax.bf16 %v2994_v3, %v909_v40 }
 0x11d   :  { %2624 = vmatprep.subr.bf16.mxu1 %v925_v60  ;;  %v1523_v60 = vpop.permute.xlu0 %1522 }
 0x11e   :  { %2625 = vmatpush3.bf16.msra.mxu1 %v917_v6  ;;  %v1535_v6 = vpop.permute.xlu1 %1534 }
 0x11f   :  { %2626 = vmatprep.subr.bf16.mxu1 %v926_v41 }
 0x122   :  { %2627 = vmatpush3.bf16.msra.mxu1 %v918_v17 }
 0x125   :  { %1152 = vmatmul.mubr.bf16.vlgmr.msra.gmra.mrb[0].mxu1 %v2893_v22 }
 0x126   :  { %1159 = vmatprep.mubr.bf16.mxu1 %v2896_v24  ;;  %v1331_v24 = vpop.permute.xlu0 %1330 }
 0x12d   :  { %1160 = vmatmul.mubr.bf16.gmra.mrb[4].mxu1 %v2898_v16 }
 0x12e   :  { %1167 = vmatprep.mubr.bf16.mxu1 %v2899_v19  ;;  %v1343_v19 = vpop.permute.xlu1 %1342 }
 0x135   :  { %1168 = vmatmul.mubr.bf16.gmra.mrb[8].mxu1 %v2901_v20 }
 0x136   :  { %1175 = vmatprep.mubr.bf16.mxu1 %v2902_v57 }
 0x13d   :  { %1176 = vmatmul.mubr.bf16.gmra.mrb[12].mxu1 %v2904_v62 }
 0x13e   :  { %1183 = vmatprep.mubr.bf16.mxu1 %v2905_v63 }
 0x145   :  { %1184 = vmatmul.mubr.bf16.gmra.mrb[16].mxu1 %v2907_v7 }
 0x146   :  { %1191 = vmatprep.mubr.bf16.mxu1 %v2908_v0  ;;  %v3683_v0 = vpop.permute.xlu0 %1546 }
 0x14d   :  { %1192 = vmatmul.mubr.bf16.gmra.mrb[20].mxu1 %v2910_v14  ;;  %v3685_v14 = vpop.permute.xlu1 %1558 }
 0x14e   :  { %1199 = vmatprep.mubr.bf16.mxu1 %v2911_v12 }
 0x155   :  { %1200 = vmatmul.mubr.bf16.gmra.mrb[24].mxu1 %v2913_v15 }
 0x156   :  { %1207 = vmatprep.mubr.bf16.mxu1 %v2914_v42 }
 0x15d   :  { %1208 = vmatmul.mubr.bf16.gmra.mrb[28].mxu1 %v2916_v2 }
 0x15e   :  { %1215 = vmatprep.mubr.bf16.mxu1 %v2917_v43 }
 0x165   :  { %1216 = vmatmul.mubr.bf16.gmra.mrb[32].mxu1 %v2919_v21 }
 0x166   :  { %1223 = vmatprep.mubr.bf16.mxu1 %v2920_v23  ;;  %v1355_v23 = vpop.permute.xlu0 %1354 }
 0x16d   :  { %1224 = vmatmul.mubr.bf16.gmra.mrb[36].mxu1 %v2922_v13  ;;  %v1367_v13 = vpop.permute.xlu1 %1366 }
 0x16e   :  { %1231 = vmatprep.mubr.bf16.mxu1 %v2923_v26 }
 0x175   :  { %1232 = vmatmul.mubr.bf16.gmra.mrb[40].mxu1 %v2925_v27 }
 0x176   :  { %1239 = vmatprep.mubr.bf16.mxu1 %v2926_v56 }
 0x17d   :  { %1240 = vmatmul.mubr.bf16.gmra.mrb[44].mxu1 %v2928_v59 }
 0x17e   :  { %1247 = vmatprep.mubr.bf16.mxu1 %v2929_v61 }
 0x185   :  { %1248 = vmatmul.mubr.bf16.gmra.mrb[48].mxu1 %v2931_v55  ;;  %v3695_v55 = vpop.permute.xlu0 %1570 }
 0x186   :  { %1255 = vmatprep.mubr.bf16.mxu1 %v2932_v28 }
 0x18d   :  { %1256 = vmatmul.mubr.bf16.gmra.mrb[52].mxu1 %v2934_v44  ;;  %v3697_v44 = vpop.permute.xlu1 %1582 }
 0x18e   :  { %1263 = vmatprep.mubr.bf16.mxu1 %v2935_v46 }
 0x195   :  { %1264 = vmatmul.mubr.bf16.gmra.mrb[56].mxu1 %v2937_v37 }
 0x196   :  { %1271 = vmatprep.mubr.bf16.mxu1 %v2938_v39 }
 0x19d   :  { %1272 = vmatmul.mubr.bf16.gmra.mrb[60].mxu1 %v2940_v47  ;;  %v3703_v47 = vpop.permute.xlu0 %1378 }
 0x1f8   :  { %v2628_v30 = vpop.f32.mrb[0].mxu1 }
 0x1f9   :  { %v2629_v31 = vpop.f32.mrb[1].mxu1 }
 0x1fa   :  { %v3650_v32 = vadd.f32 %v2629_v31, %v2628_v30  ;;  %v2631_v4 = vpop.f32.mrb[2].mxu1  ;;  %v1391_v31 = vpop.permute.xlu1 %1390 }
 0x1fb   :  { %v2632_v10 = vpop.f32.mrb[3].mxu1 }
 0x1fc   :  { %v3652_v11 = vadd.f32 %v2632_v10, %v2631_v4 }
 0x1fe   :  { %v1280_v25 = vpack.c.bf16 %v3652_v11, %v3650_v32 }
 0x200   :  { %v2634_v52 = vpop.f32.mrb[4].mxu1 }
 0x201   :  { %v2635_v54 = vpop.f32.mrb[5].mxu1 }
 0x202   :  { %v3659_v33 = vadd.f32 %v2635_v54, %v2634_v52  ;;  %v2637_v34 = vpop.f32.mrb[6].mxu1 }
 0x203   :  { %v2638_v35 = vpop.f32.mrb[7].mxu1 }
 0x204   :  { %v3661_v29 = vadd.f32 %v2638_v35, %v2637_v34  ;;  %v3711_v34 = vpop.permute.xlu0 %1594  ;;  %v3713_v35 = vpop.permute.xlu1 %1606 }
 0x206   :  { %v1281_v36 = vpack.c.bf16 %v3661_v29, %v3659_v33 }
 0x208   :  { %v2640_v48 = vpop.f32.mrb[8].mxu1 }
 0x209   :  { %v2641_v50 = vpop.f32.mrb[9].mxu1 }
 0x20a   :  { %v3665_v51 = vadd.f32 %v2641_v50, %v2640_v48  ;;  %v2643_v38 = vpop.f32.mrb[10].mxu1  ;;  %v1339_v50 = vrot.slane %v1331_v24, %v3442_v18 }
 0x20b   :  { %v2644_v49 = vpop.f32.mrb[11].mxu1 }
 0x20c   :  { %v3667_v1 = vadd.f32 %v2644_v49, %v2643_v38  ;;  %v1351_v38 = vrot.slane %v1343_v19, %v3442_v18 }
 0x20e   :  { %v1282_v8 = vpack.c.bf16 %v3667_v1, %v3665_v51 }
 0x210   :  { %v2646_v9 = vpop.f32.mrb[12].mxu1 }
 0x211   :  { %v2647_v53 = vpop.f32.mrb[13].mxu1 }
 0x212   :  { %v3671_v40 = vadd.f32 %v2647_v53, %v2646_v9  ;;  %v2649_v58 = vpop.f32.mrb[14].mxu1  ;;  %v1531_v9 = vrot.slane %v1523_v60, %v3442_v18  ;;  %v1543_v53 = vrot.slane %v1535_v6, %v3442_v18  ;;  %v1363_v60 = vrot.slane %v1355_v23, %v3442_v18 }
 0x213   :  { %v2650_v5 = vpop.f32.mrb[15].mxu1  ;;  %v1375_v6 = vrot.slane %v1367_v13, %v3442_v18 }
 0x214   :  { %v3673_v41 = vadd.f32 %v2650_v5, %v2649_v58 }
 0x215   :  { %v2553_v13 = vcombine.low %v1363_v60, %v1375_v6 }
 0x216   :  { %v1283_v17 = vpack.c.bf16 %v3673_v41, %v3671_v40 }
 0x218   :  { %v2652_v22 = vpop.f32.mrb[16].mxu1 }
 0x219   :  { %v2653_v16 = vpop.f32.mrb[17].mxu1 }
 0x21a   :  { %v3677_v20 = vadd.f32 %v2653_v16, %v2652_v22  ;;  %v2655_v57 = vpop.f32.mrb[18].mxu1 }
 0x21b   :  { %v2656_v62 = vpop.f32.mrb[19].mxu1 }
 0x21c   :  { %v3679_v63 = vadd.f32 %v2656_v62, %v2655_v57  ;;  %v2552_v57 = vcombine.low %v1339_v50, %v1351_v38  ;;  %v3719_v62 = vpop.permute.xlu0 %1402  ;;  %v1387_v38 = vrot.slane %v3703_v47, %v3442_v18 }
 0x21d   :  { %v1411_v60 = vrot.slane %v3719_v62, %v3442_v18 }
 0x21e   :  { %v1284_v7 = vpack.c.bf16 %v3679_v63, %v3677_v20  ;;  %v1808_v24 = vadd.bf16 %v2552_v57, %v1280_v25 }
 0x220   :  { %v2658_v12 = vpop.f32.mrb[20].mxu1  ;;  %v1824_v32 = vmax.bf16 %v2994_v3, %v1808_v24 }
 0x221   :  { %v2659_v15 = vpop.f32.mrb[21].mxu1 }
 0x222   :  { %v3687_v42 = vadd.f32 %v2659_v15, %v2658_v12  ;;  %v2661_v2 = vpop.f32.mrb[22].mxu1  ;;  %v2560_v12 = vcombine.low %v1531_v9, %v1543_v53  ;;  %v1415_v15 = vpop.permute.xlu1 %1414 }
 0x223   :  { %v2662_v43 = vpop.f32.mrb[23].mxu1  ;;  %v1423_v6 = vrot.slane %v1415_v15, %v3442_v18 }
 0x224   :  { %v3689_v21 = vadd.f32 %v2662_v43, %v2661_v2 }
 0x226   :  { %v1285_v26 = vpack.c.bf16 %v3689_v21, %v3687_v42  ;;  %v3734_v25 = vpop.permute.xlu1 %1630 }
 0x228   :  { %v2664_v27 = vpop.f32.mrb[24].mxu1 }
 0x229   :  { %v2665_v56 = vpop.f32.mrb[25].mxu1 }
 0x22a   :  { %v3693_v59 = vadd.f32 %v2665_v56, %v2664_v27  ;;  %v2667_v61 = vpop.f32.mrb[26].mxu1  ;;  %v1555_v56 = vrot.slane %v3683_v0, %v3442_v18 }
 0x22b   :  { %v2668_v28 = vpop.f32.mrb[27].mxu1 }
 0x22c   :  { %v3699_v46 = vadd.f32 %v2668_v28, %v2667_v61  ;;  %v1567_v61 = vrot.slane %v3685_v14, %v3442_v18  ;;  %v1809_v14 = vadd.bf16 %v2553_v13, %v1281_v36 }
 0x22e   :  { %v1286_v37 = vpack.c.bf16 %v3699_v46, %v3693_v59  ;;  %v1825_v29 = vmax.bf16 %v2994_v3, %v1809_v14 }
 0x230   :  { %v2670_v39 = vpop.f32.mrb[28].mxu1 }
 0x231   :  { %v2671_v30 = vpop.f32.mrb[29].mxu1 }
 0x232   :  { %v3705_v4 = vadd.f32 %v2671_v30, %v2670_v39  ;;  %v2673_v10 = vpop.f32.mrb[30].mxu1 }
 0x233   :  { %v2674_v45 = vpop.f32.mrb[31].mxu1 }
 0x234   :  { %v3707_v52 = vadd.f32 %v2674_v45, %v2673_v10  ;;  %v3731_v10 = vpop.permute.xlu0 %1618  ;;  %v2561_v45 = vcombine.low %v1555_v56, %v1567_v61  ;;  %v1603_v56 = vrot.slane %v3711_v34, %v3442_v18  ;;  %v1615_v61 = vrot.slane %v3713_v35, %v3442_v18 }
 0x236   :  { %v1287_v54 = vpack.c.bf16 %v3707_v52, %v3705_v4  ;;  %v2563_v15 = vcombine.low %v1603_v56, %v1615_v61  ;;  %v2946_v4 = vld [vmem:[%s3918_s6 + $0x10] ss:$8 sps:$4 sm:$0xff]   ;;  %v2947_v52 = vld [vmem:[%s3918_s6 + $0x24] ss:$8 sps:$4 sm:$0xff]  }
 0x238   :  { %v2676_v48 = vpop.f32.mrb[32].mxu1  ;;  %v1427_v9 = vpop.permute.xlu0 %1426 }
 0x239   :  { %v2677_v49 = vpop.f32.mrb[33].mxu1 }
 0x23a   :  { %v2678_v58 = vadd.f32 %v2677_v49, %v2676_v48  ;;  %v2679_v5 = vpop.f32.mrb[34].mxu1  ;;  %v1399_v49 = vrot.slane %v1391_v31, %v3442_v18 }
 0x23b   :  { %v2680_v22 = vpop.f32.mrb[35].mxu1 }
 0x23c   :  { %v2681_v16 = vadd.f32 %v2680_v22, %v2679_v5  ;;  %v1591_v5 = vrot.slane %v3697_v44, %v3442_v18  ;;  %v1439_v22 = vpop.permute.xlu1 %1438  ;;  %v2554_v47 = vcombine.low %v1387_v38, %v1399_v49  ;;  %v3748_v24 = vpop.permute.xlu0 %1642 }
 0x23e   :  { %v1288_v2 = vpack.c.bf16 %v2681_v16, %v2678_v58  ;;  %v1579_v58 = vrot.slane %v3695_v55, %v3442_v18  ;;  %v1810_v55 = vadd.bf16 %v2554_v47, %v1282_v8  ;;  %v1651_v47 = vrot.slane %v3748_v24, %v3442_v18 }
 0x240   :  { %v1816_v19 = vadd.bf16 %v2560_v12, %v1288_v2  ;;  %v2682_v43 = vpop.f32.mrb[36].mxu1  ;;  %v2562_v31 = vcombine.low %v1579_v58, %v1591_v5  ;;  %v1655_v44 = vpop.permute.xlu1 %1654  ;;  %v1826_v1 = vmax.bf16 %v2994_v3, %v1810_v55 }
 0x241   :  { %v2683_v27 = vpop.f32.mrb[37].mxu1  ;;  %v1451_v62 = vpop.permute.xlu0 %1450 }
 0x242   :  { %v2684_v28 = vadd.f32 %v2683_v27, %v2682_v43  ;;  %v2685_v39 = vpop.f32.mrb[38].mxu1  ;;  %v1832_v30 = vmax.bf16 %v2994_v3, %v1816_v19 }
 0x243   :  { %v2686_v11 = vpop.f32.mrb[39].mxu1 }
 0x244   :  { %v2687_v23 = vadd.f32 %v2686_v11, %v2685_v39  ;;  %2724 = vmatprep.subr.bf16.mxu0 %v1832_v30  ;;  %v1463_v11 = vpop.permute.xlu1 %1462 }
 0x245   :  { %2725 = vmatpush3.bf16.msra.mxu0 %v1824_v32  ;;  %v2555_v32 = vcombine.low %v1411_v60, %v1423_v6  ;;  %v1667_v58 = vpop.permute.xlu0 %1666 }
 0x246   :  { %v1289_v0 = vpack.c.bf16 %v2687_v23, %v2684_v28 }
 0x247   :  { %v1811_v34 = vadd.bf16 %v2555_v32, %v1283_v17 }
 0x248   :  { %v1817_v48 = vadd.bf16 %v2561_v45, %v1289_v0  ;;  %v2688_v50 = vpop.f32.mrb[40].mxu1  ;;  %v1435_v45 = vrot.slane %v1427_v9, %v3442_v18  ;;  %v1447_v0 = vrot.slane %v1439_v22, %v3442_v18  ;;  %v1679_v17 = vpop.permute.xlu1 %1678 }
 0x249   :  { %v2689_v53 = vpop.f32.mrb[41].mxu1  ;;  %v1827_v40 = vmax.bf16 %v2994_v3, %v1811_v34 }
 0x24a   :  { %v2690_v16 = vadd.f32 %v2689_v53, %v2688_v50  ;;  %v2691_v57 = vpop.f32.mrb[42].mxu1  ;;  %v1833_v33 = vmax.bf16 %v2994_v3, %v1817_v48  ;;  %v1627_v48 = vrot.slane %v3731_v10, %v3442_v18  ;;  %v1639_v50 = vrot.slane %v3734_v25, %v3442_v18 }
 0x24b   :  { %v2692_v36 = vpop.f32.mrb[43].mxu1  ;;  %v2556_v9 = vcombine.low %v1435_v45, %v1447_v0 }
 0x24c   :  { %v2693_v12 = vadd.f32 %v2692_v36, %v2691_v57  ;;  %2726 = vmatprep.subr.bf16.mxu0 %v1833_v33  ;;  %v2564_v22 = vcombine.low %v1627_v48, %v1639_v50  ;;  %v1459_v33 = vrot.slane %v1451_v62, %v3442_v18  ;;  %v1475_v36 = vpop.permute.xlu0 %1474 }
 0x24d   :  { %2727 = vmatpush3.bf16.msra.mxu0 %v1825_v29  ;;  %v1812_v10 = vadd.bf16 %v2556_v9, %v1284_v7  ;;  %v1471_v29 = vrot.slane %v1463_v11, %v3442_v18 }
 0x24e   :  { %v1290_v2 = vpack.c.bf16 %v2693_v12, %v2690_v16 }
 0x24f   :  { %v1828_v20 = vmax.bf16 %v2994_v3, %v1812_v10  ;;  %v2557_v60 = vcombine.low %v1459_v33, %v1471_v29  ;;  %v2944_v33 = vld [vmem:[%s3918_s6 + $0x14] ss:$8 sps:$4 sm:$0xff]  }
 0x250   :  { %v1818_v19 = vadd.bf16 %v2562_v31, %v1290_v2  ;;  %v2694_v43 = vpop.f32.mrb[44].mxu1  ;;  %v1663_v31 = vrot.slane %v1655_v44, %v3442_v18  ;;  %v1487_v2 = vpop.permute.xlu1 %1486  ;;  %v2950_v29 = vld [vmem:[%s3918_s6 + $0x34] ss:$8 sps:$4 sm:$0xff]  }
 0x251   :  { %v2695_v27 = vpop.f32.mrb[45].mxu1  ;;  %v1691_v56 = vpop.permute.xlu0 %1690  ;;  %v1813_v24 = vadd.bf16 %v2557_v60, %v1285_v26  ;;  %v2998_v60 = vmov 2  }
 0x252   :  { %v2696_v28 = vadd.f32 %v2695_v27, %v2694_v43  ;;  %v2697_v39 = vpop.f32.mrb[46].mxu1  ;;  %v1834_v51 = vmax.bf16 %v2994_v3, %v1818_v19  ;;  %v2565_v6 = vcombine.low %v1651_v47, %v1663_v31  ;;  %v2955_v47 = vld [vmem:[%s3918_s6 + $0x40] ss:$8 sps:$4 sm:$0xff]   ;;  %v2956_v31 = vld [vmem:[%s3918_s6 + $0x54] ss:$8 sps:$4 sm:$0xff]   ;;  %2865 = vset.pattern.permute.xlu1 %v2998_v60  ;;  %2864 = vset.pattern.permute.xlu0 %v2998_v60 }
 0x253   :  { %v2698_v8 = vpop.f32.mrb[47].mxu1  ;;  %v1829_v11 = vmax.bf16 %v2994_v3, %v1813_v24  ;;  %v3001_v24 = vmov 1  }
 0x254   :  { %v2699_v30 = vadd.f32 %v2698_v8, %v2697_v39  ;;  %2728 = vmatprep.subr.bf16.mxu0 %v1834_v51  ;;  %v1703_v44 = vpop.permute.xlu1 %1702  ;;  %v1483_v39 = vrot.slane %v1475_v36, %v3442_v18  ;;  %v1495_v51 = vrot.slane %v1487_v2, %v3442_v18  ;;  %v1675_v8 = vrot.slane %v1667_v58, %v3442_v18  ;;  %v2952_v36 = vld [vmem:[%s3918_s6 + $0x30] ss:$8 sps:$4 sm:$0xff]  }
 0x255   :  { %2729 = vmatpush3.bf16.msra.mxu0 %v1826_v1  ;;  %v1499_v34 = vpop.permute.xlu0 %1498  ;;  %v2958_v2 = vld [vmem:[%s3918_s6 + $0x50] ss:$8 sps:$4 sm:$0xff]  }
 0x256   :  { %v1291_v23 = vpack.c.bf16 %v2699_v30, %v2696_v28  ;;  %v1687_v30 = vrot.slane %v1679_v17, %v3442_v18  ;;  %v2558_v26 = vcombine.low %v1483_v39, %v1495_v51  ;;  %v1507_v48 = vrot.slane %v1499_v34, %v3442_v18 }
 0x258   :  { %v1819_v35 = vadd.bf16 %v2563_v15, %v1291_v23  ;;  %v2700_v13 = vpop.f32.mrb[48].mxu1  ;;  %v2566_v23 = vcombine.low %v1675_v8, %v1687_v30  ;;  %v1814_v45 = vadd.bf16 %v2558_v26, %v1286_v37 }
 0x259   :  { %v2701_v14 = vpop.f32.mrb[49].mxu1 }
 0x25a   :  { %v2702_v38 = vadd.f32 %v2701_v14, %v2700_v13  ;;  %v2703_v49 = vpop.f32.mrb[50].mxu1  ;;  %v1835_v53 = vmax.bf16 %v2994_v3, %v1819_v35  ;;  %v1511_v35 = vpop.permute.xlu1 %1510  ;;  %v1830_v17 = vmax.bf16 %v2994_v3, %v1814_v45 }
 0x25b   :  { %v2704_v41 = vpop.f32.mrb[51].mxu1  ;;  %v1519_v50 = vrot.slane %v1511_v35, %v3442_v18 }
 0x25c   :  { %v2705_v5 = vadd.f32 %v2704_v41, %v2703_v49  ;;  %2730 = vmatprep.subr.bf16.mxu0 %v1835_v53  ;;  %v1699_v49 = vrot.slane %v1691_v56, %v3442_v18  ;;  %v1711_v53 = vrot.slane %v1703_v44, %v3442_v18  ;;  %v3000_v56 = vmov 4  }
 0x25d   :  { %2731 = vmatpush3.bf16.msra.mxu0 %v1827_v40  ;;  %v2559_v46 = vcombine.low %v1507_v48, %v1519_v50  ;;  %v3002_v44 = vmov 6  }
 0x25e   :  { %v1292_v16 = vpack.c.bf16 %v2705_v5, %v2702_v38  ;;  %v2567_v37 = vcombine.low %v1699_v49, %v1711_v53  ;;  %v2072_v39 = vpop.permute.xlu1 %2071 }
 0x25f   :  { %v2080_v30 = vrot.slane %v2072_v39, %v3442_v18 }
 0x260   :  { %v1820_v25 = vadd.bf16 %v2564_v22, %v1292_v16  ;;  %v2706_v57 = vpop.f32.mrb[52].mxu1  ;;  %v1815_v22 = vadd.bf16 %v2559_v46, %v1287_v54  ;;  %v2949_v54 = vld [vmem:[%s3918_s6 + $0x20] ss:$8 sps:$4 sm:$0xff]  }
 0x261   :  { %v2707_v12 = vpop.f32.mrb[53].mxu1 }
 0x262   :  { %v2708_v55 = vadd.f32 %v2707_v12, %v2706_v57  ;;  %v2709_v19 = vpop.f32.mrb[54].mxu1  ;;  %v1836_v43 = vmax.bf16 %v2994_v3, %v1820_v25  ;;  %v1831_v25 = vmax.bf16 %v2994_v3, %v1815_v22  ;;  %v2941_v57 = vld [vmem:[%s3918_s6] ss:$8 sps:$4 sm:$0xff]   ;;  %v2953_v12 = vld [vmem:[%s3918_s6 + $0x44] ss:$8 sps:$4 sm:$0xff]  }
 0x263   :  { %v2710_v63 = vpop.f32.mrb[55].mxu1 }
 0x264   :  { %v2711_v7 = vadd.f32 %v2710_v63, %v2709_v19  ;;  %2732 = vmatprep.subr.bf16.mxu0 %v1836_v43  ;;  %v2961_v19 = vld [vmem:[%s3918_s6 + $0x60] ss:$8 sps:$4 sm:$0xff]   ;;  %v2962_v43 = vld [vmem:[%s3918_s6 + $0x74] ss:$8 sps:$4 sm:$0xff]   ;;  %v2996_v63 = vmov 0.0  }
 0x265   :  { %2733 = vmatpush3.bf16.msra.mxu0 %v1828_v20  ;;  %v2964_v20 = vld [vmem:[%s3918_s6 + $0x70] ss:$8 sps:$4 sm:$0xff]  }
 0x266   :  { %v1293_v27 = vpack.c.bf16 %v2711_v7, %v2708_v55  ;;  %v2959_v55 = vld [vmem:[%s3918_s6 + $0x64] ss:$8 sps:$4 sm:$0xff]  }
 0x267   :  { %v2314_v7 = vld [vmem:[%s3921_s9 + $0x8] sm:$0xff] }
 0x268   :  { %v1821_v61 = vadd.bf16 %v2565_v6, %v1293_v27  ;;  %v2712_v28 = vpop.f32.mrb[56].mxu1  ;;  %v2313_v6 = vld [vmem:[%s3921_s9] sm:$0xff]  ;;  %2405 = vperm.xlu1 %2865, %v2314_v7   ;;  %v2999_v27 = vmov 3  }
 0x269   :  { %v2713_v1 = vpop.f32.mrb[57].mxu1  ;;  %2401 = vperm.xlu0 %2864, %v2313_v6  }
 0x26a   :  { %v2714_v32 = vadd.f32 %v2713_v1, %v2712_v28  ;;  %v2715_v62 = vpop.f32.mrb[58].mxu1  ;;  %v1837_v15 = vmax.bf16 %v2994_v3, %v1821_v61  ;;  %v3003_v61 = vmov 5   ;;  %v2060_v28 = vpop.permute.xlu0 %2059 }
 0x26b   :  { %v2716_v42 = vpop.f32.mrb[59].mxu1  ;;  %v2068_v8 = vrot.slane %v2060_v28, %v3442_v18 }
 0x26c   :  { %v2717_v21 = vadd.f32 %v2716_v42, %v2715_v62  ;;  %2734 = vmatprep.subr.bf16.mxu0 %v1837_v15  ;;  %2866 = vset.pattern.permute.xlu1 %v2999_v27 }
 0x26d   :  { %2735 = vmatpush3.bf16.msra.mxu0 %v1829_v11  ;;  %2867 = vset.pattern.permute.xlu0 %v2999_v27  ;;  %v2584_v42 = vcombine.low %v2068_v8, %v2080_v30 }
 0x26e   :  { %v1294_v13 = vpack.c.bf16 %v2717_v21, %v2714_v32  ;;  %2415 = vperm.xlu1 %2866, %v2313_v6   ;;  %2419 = vperm.xlu0 %2867, %v2314_v7   ;;  %v2084_v26 = vpop.permute.xlu0 %2083 }
 0x26f   :  { %v2092_v45 = vrot.slane %v2084_v26, %v3442_v18 }
 0x270   :  { %v1822_v0 = vadd.bf16 %v2566_v23, %v1294_v13  ;;  %v2718_v14 = vpop.f32.mrb[60].mxu1  ;;  %v2096_v23 = vpop.permute.xlu1 %2095 }
 0x271   :  { %v2719_v38 = vpop.f32.mrb[61].mxu1 }
 0x272   :  { %v2720_v58 = vadd.f32 %v2719_v38, %v2718_v14  ;;  %v2721_v40 = vpop.f32.mrb[62].mxu1  ;;  %v1838_v41 = vmax.bf16 %v2994_v3, %v1822_v0  ;;  %2868 = vset.pattern.permute.xlu1 %v2994_v3  ;;  %2869 = vset.pattern.permute.xlu0 %v3000_v56  ;;  %v2104_v0 = vrot.slane %v2096_v23, %v3442_v18 }
 0x273   :  { %v2722_v5 = vpop.f32.mrb[63].mxu1  ;;  %2319 = vperm.xlu1 %2868, %v2313_v6   ;;  %2427 = vperm.xlu0 %2869, %v2313_v6  }
 0x274   :  { %v2723_v59 = vadd.f32 %v2722_v5, %v2721_v40  ;;  %2736 = vmatprep.subr.bf16.mxu0 %v1838_v41  ;;  %v2585_v53 = vcombine.low %v2092_v45, %v2104_v0  ;;  %v2108_v40 = vpop.permute.xlu0 %2107  ;;  %v2120_v41 = vpop.permute.xlu1 %2119 }
 0x275   :  { %2737 = vmatpush3.bf16.msra.mxu0 %v1830_v17  ;;  %v2116_v46 = vrot.slane %v2108_v40, %v3442_v18 }
 0x276   :  { %v1295_v9 = vpack.c.bf16 %v2723_v59, %v2720_v58 }
 0x277   :  { %2324 = vperm.xlu1 %2868, %v2314_v7   ;;  %2872 = vset.pattern.permute.xlu0 %v3001_v24 }
 0x278   :  { %v1823_v16 = vadd.bf16 %v2567_v37, %v1295_v9  ;;  %2381 = vperm.xlu0 %2872, %v2314_v7   ;;  %v2128_v37 = vrot.slane %v2120_v41, %v3442_v18 }
 0x27a   :  { %v1839_v10 = vmax.bf16 %v2994_v3, %v1823_v16 }
 0x27b   :  { %2870 = vset.pattern.permute.xlu1 %v3000_v56 }
 0x27c   :  { %2738 = vmatprep.subr.bf16.mxu0 %v1839_v10  ;;  %2431 = vperm.xlu1 %2870, %v2314_v7  }
 0x27d   :  { %2739 = vmatpush3.bf16.msra.mxu0 %v1831_v25  ;;  %2875 = vset.pattern.permute.xlu0 %v3002_v44 }
 0x27e   :  { %2831 = vmatprep.subr.bf16.mxu0 %v2996_v63 }
 0x280   :  { %1969 = vmatmul.mubr.bf16.vlgmr.msra.gmra.mrb[32].mxu0 %v2941_v57  ;;  %2871 = vset.pattern.permute.xlu1 %v3001_v24  ;;  %v2586_v57 = vcombine.low %v2116_v46, %v2128_v37 }
 0x281   :  { %1976 = vmatprep.mubr.bf16.mxu0 %v2944_v33  ;;  %2377 = vperm.xlu1 %2871, %v2313_v6  }
 0x285   :  { %2873 = vset.pattern.permute.xlu1 %v3002_v44 }
 0x286   :  { %2444 = vperm.xlu1 %2873, %v2313_v6  }
 0x288   :  { %1977 = vmatmul.mubr.bf16.gmra.mrb[36].mxu0 %v2946_v4  ;;  %v2132_v4 = vpop.permute.xlu0 %2131 }
 0x289   :  { %1984 = vmatprep.mubr.bf16.mxu0 %v2947_v52  ;;  %v2144_v52 = vpop.permute.xlu1 %2143 }
 0x28a   :  { %2874 = vset.pattern.permute.xlu1 %v3003_v61 }
 0x28b   :  { %2394 = vperm.xlu1 %2874, %v2313_v6  }
 0x28c   :  { %v2156_v60 = vpop.permute.xlu0 %2155 }
 0x28d   :  { %v2168_v6 = vpop.permute.xlu1 %2167  ;;  %v2164_v44 = vrot.slane %v2156_v60, %v3442_v18  ;;  %v2593_v60 = vld [vmem:[%s3913_s1] ss:$0 sm:$0xff] }
 0x28e   :  { %v2176_v61 = vrot.slane %v2168_v6, %v3442_v18 }
 0x290   :  { %1985 = vmatmul.mubr.bf16.gmra.mrb[40].mxu0 %v2949_v54  ;;  %v2588_v30 = vcombine.low %v2164_v44, %v2176_v61 }
 0x291   :  { %1992 = vmatprep.mubr.bf16.mxu0 %v2950_v29 }
 0x298   :  { %1993 = vmatmul.mubr.bf16.gmra.mrb[44].mxu0 %v2952_v36 }
 0x299   :  { %2000 = vmatprep.mubr.bf16.mxu0 %v2953_v12  ;;  %v2140_v12 = vrot.slane %v2132_v4, %v3442_v18 }
 0x2a0   :  { %2001 = vmatmul.mubr.bf16.gmra.mrb[48].mxu0 %v2955_v47  ;;  %v2152_v47 = vrot.slane %v2144_v52, %v3442_v18 }
 0x2a1   :  { %2008 = vmatprep.mubr.bf16.mxu0 %v2956_v31 }
 0x2a8   :  { %2009 = vmatmul.mubr.bf16.gmra.mrb[52].mxu0 %v2958_v2 }
 0x2a9   :  { %2016 = vmatprep.mubr.bf16.mxu0 %v2959_v55 }
 0x2b0   :  { %2017 = vmatmul.mubr.bf16.gmra.mrb[56].mxu0 %v2961_v19 }
 0x2b1   :  { %2024 = vmatprep.mubr.bf16.mxu0 %v2962_v43 }
 0x2b8   :  { %2025 = vmatmul.mubr.bf16.gmra.mrb[60].mxu0 %v2964_v20  ;;  %v2587_v20 = vcombine.low %v2140_v12, %v2152_v47 }
 0x2b9   :  { %2847 = vmatprep.mubr.msk.bf16.mxu0 %vm2997_vm1, %v2996_v63 }
 0x353   :  { %v2740_v51 = vpop.f32.mrb[32].mxu0 }
 0x354   :  { %v2741_v1 = vpop.f32.mrb[33].mxu0 }
 0x355   :  { %v2742_v32 = vadd.f32 %v2741_v1, %v2740_v51  ;;  %v2743_v62 = vpop.f32.mrb[34].mxu0 }
 0x356   :  { %v2744_v15 = vpop.f32.mrb[35].mxu0 }
 0x357   :  { %v2745_v11 = vadd.f32 %v2744_v15, %v2743_v62  ;;  %v2180_v62 = vpop.permute.xlu0 %2179  ;;  %v2192_v15 = vpop.permute.xlu1 %2191 }
 0x358   :  { %v2188_v26 = vrot.slane %v2180_v62, %v3442_v18  ;;  %v2200_v23 = vrot.slane %v2192_v15, %v3442_v18 }
 0x359   :  { %v2033_v21 = vpack.c.bf16 %v2745_v11, %v2742_v32 }
 0x35b   :  { %v2297_v34 = vadd.bf16 %v2584_v42, %v2033_v21  ;;  %v2746_v35 = vpop.f32.mrb[36].mxu0 }
 0x35c   :  { %v2747_v13 = vpop.f32.mrb[37].mxu0 }
 0x35d   :  { %v2305_v14 = vmax.bf16 %v2994_v3, %v2297_v34  ;;  %v2748_v48 = vadd.f32 %v2747_v13, %v2746_v35  ;;  %v2749_v50 = vpop.f32.mrb[38].mxu0 }
 0x35e   :  { %v2750_v38 = vpop.f32.mrb[39].mxu0 }
 0x35f   :  { %v2751_v49 = vadd.f32 %v2750_v38, %v2749_v50  ;;  %2832 = vmatpush3.bf16.msra.mxu0 %v2305_v14  ;;  %v2589_v14 = vcombine.low %v2188_v26, %v2200_v23  ;;  %v2204_v50 = vpop.permute.xlu0 %2203  ;;  %v2216_v38 = vpop.permute.xlu1 %2215 }
 0x360   :  { %2833 = vmatprep.subr.bf16.mxu0 %v2996_v63  ;;  %v2212_v40 = vrot.slane %v2204_v50, %v3442_v18  ;;  %v2224_v41 = vrot.slane %v2216_v38, %v3442_v18 }
 0x361   :  { %v2034_v58 = vpack.c.bf16 %v2751_v49, %v2748_v48 }
 0x363   :  { %v2298_v17 = vadd.bf16 %v2585_v53, %v2034_v58  ;;  %v2752_v5 = vpop.f32.mrb[40].mxu0 }
 0x364   :  { %v2753_v59 = vpop.f32.mrb[41].mxu0 }
 0x365   :  { %v2306_v9 = vmax.bf16 %v2994_v3, %v2298_v17  ;;  %v2754_v22 = vadd.f32 %v2753_v59, %v2752_v5  ;;  %v2755_v16 = vpop.f32.mrb[42].mxu0 }
 0x366   :  { %v2756_v10 = vpop.f32.mrb[43].mxu0 }
 0x367   :  { %v2757_v25 = vadd.f32 %v2756_v10, %v2755_v16  ;;  %2834 = vmatpush3.bf16.msra.mxu0 %v2306_v9  ;;  %v2590_v9 = vcombine.low %v2212_v40, %v2224_v41  ;;  %v2228_v16 = vpop.permute.xlu0 %2227  ;;  %v2240_v10 = vpop.permute.xlu1 %2239 }
 0x368   :  { %2835 = vmatprep.subr.bf16.mxu0 %v2996_v63  ;;  %v2236_v4 = vrot.slane %v2228_v16, %v3442_v18  ;;  %v2248_v52 = vrot.slane %v2240_v10, %v3442_v18 }
 0x369   :  { %v2035_v33 = vpack.c.bf16 %v2757_v25, %v2754_v22 }
 0x36b   :  { %v2299_v54 = vadd.bf16 %v2586_v57, %v2035_v33  ;;  %v2758_v29 = vpop.f32.mrb[44].mxu0  ;;  %v2406_v18 = vpop.permute.xlu1 %2405 }
 0x36c   :  { %v2759_v36 = vpop.f32.mrb[45].mxu0 }
 0x36d   :  { %v2307_v31 = vmax.bf16 %v2994_v3, %v2299_v54  ;;  %v2760_v2 = vadd.f32 %v2759_v36, %v2758_v29  ;;  %v2761_v55 = vpop.f32.mrb[46].mxu0 }
 0x36e   :  { %v2762_v19 = vpop.f32.mrb[47].mxu0 }
 0x36f   :  { %v2763_v43 = vadd.f32 %v2762_v19, %v2761_v55  ;;  %2836 = vmatpush3.bf16.msra.mxu0 %v2307_v31  ;;  %v2591_v31 = vcombine.low %v2236_v4, %v2248_v52 }
 0x370   :  { %2837 = vmatprep.subr.bf16.mxu0 %v2996_v63 }
 0x371   :  { %v2036_v7 = vpack.c.bf16 %v2763_v43, %v2760_v2  ;;  %v2965_v43 = vld [vmem:[%s3920_s8] sm:$0xff]  }
 0x373   :  { %v2300_v27 = vadd.bf16 %v2587_v20, %v2036_v7  ;;  %v2764_v56 = vpop.f32.mrb[48].mxu0  ;;  %v2416_v20 = vpop.permute.xlu1 %2415 }
 0x374   :  { %v2765_v24 = vpop.f32.mrb[49].mxu0  ;;  %v2402_v7 = vpop.permute.xlu0 %2401 }
 0x375   :  { %v2308_v28 = vmax.bf16 %v2994_v3, %v2300_v27  ;;  %v2766_v39 = vadd.f32 %v2765_v24, %v2764_v56  ;;  %v2767_v51 = vpop.f32.mrb[50].mxu0  ;;  %v2412_v27 = vmul.f32 %v2593_v60, %v2402_v7 }
 0x376   :  { %v2768_v1 = vpop.f32.mrb[51].mxu0 }
 0x377   :  { %v2769_v8 = vadd.f32 %v2768_v1, %v2767_v51  ;;  %2838 = vmatpush3.bf16.msra.mxu0 %v2308_v28  ;;  %v2320_v6 = vpop.permute.xlu1 %2319  ;;  %v2422_v44 = vadd.f32 %v2416_v20, %v2412_v27 }
 0x378   :  { %2839 = vmatprep.subr.bf16.mxu0 %v2996_v63  ;;  %v2420_v56 = vpop.permute.xlu0 %2419 }
 0x379   :  { %v2037_v32 = vpack.c.bf16 %v2769_v8, %v2766_v39  ;;  %v2424_v28 = vmax.f32 %v2422_v44, 0.0 }
 0x37b   :  { %v2301_v11 = vadd.bf16 %v2588_v30, %v2037_v32  ;;  %v2770_v42 = vpop.f32.mrb[52].mxu0  ;;  %v2325_v24 = vpop.permute.xlu1 %2324 }
 0x37c   :  { %v2771_v21 = vpop.f32.mrb[53].mxu0  ;;  %v2428_v39 = vpop.permute.xlu0 %2427 }
 0x37d   :  { %v2309_v34 = vmax.bf16 %v2994_v3, %v2301_v11  ;;  %v2772_v35 = vadd.f32 %v2771_v21, %v2770_v42  ;;  %v2773_v13 = vpop.f32.mrb[54].mxu0  ;;  %v2434_v1 = vmul.f32 %v2428_v39, %v2424_v28 }
 0x37e   :  { %v2774_v45 = vpop.f32.mrb[55].mxu0 }
 0x37f   :  { %v2775_v0 = vadd.f32 %v2774_v45, %v2773_v13  ;;  %2840 = vmatpush3.bf16.msra.mxu0 %v2309_v34  ;;  %v2432_v51 = vpop.permute.xlu1 %2431 }
 0x380   :  { %2841 = vmatprep.subr.bf16.mxu0 %v2996_v63  ;;  %v2382_v13 = vpop.permute.xlu0 %2381 }
 0x381   :  { %v2038_v48 = vpack.c.bf16 %v2775_v0, %v2772_v35 }
 0x383   :  { %v2302_v49 = vadd.bf16 %v2589_v14, %v2038_v48  ;;  %v2776_v53 = vpop.f32.mrb[56].mxu0  ;;  %v2378_v0 = vpop.permute.xlu1 %2377 }
 0x384   :  { %v2777_v58 = vpop.f32.mrb[57].mxu0 }
 0x385   :  { %v2310_v17 = vmax.bf16 %v2994_v3, %v2302_v49  ;;  %v2778_v5 = vadd.f32 %v2777_v58, %v2776_v53  ;;  %v2779_v59 = vpop.f32.mrb[58].mxu0 }
 0x386   :  { %v2780_v46 = vpop.f32.mrb[59].mxu0 }
 0x387   :  { %v2781_v37 = vadd.f32 %v2780_v46, %v2779_v59  ;;  %2842 = vmatpush3.bf16.msra.mxu0 %v2310_v17  ;;  %v2445_v17 = vpop.permute.xlu1 %2444 }
 0x388   :  { %2843 = vmatprep.subr.bf16.mxu0 %v2996_v63 }
 0x389   :  { %v2039_v22 = vpack.c.bf16 %v2781_v37, %v2778_v5  ;;  %v2399_v37 = vld [vmem:[%s3913_s1 + $0x1] sm:$0x1] }
 0x38b   :  { %v2303_v25 = vadd.bf16 %v2590_v9, %v2039_v22  ;;  %v2782_v57 = vpop.f32.mrb[60].mxu0  ;;  %v2395_v9 = vpop.permute.xlu1 %2394 }
 0x38c   :  { %v2783_v33 = vpop.f32.mrb[61].mxu0 }
 0x38d   :  { %v2311_v54 = vmax.bf16 %v2994_v3, %v2303_v25  ;;  %v2784_v29 = vadd.f32 %v2783_v33, %v2782_v57  ;;  %v2785_v36 = vpop.f32.mrb[62].mxu0 }
 0x38e   :  { %v2786_v12 = vpop.f32.mrb[63].mxu0 }
 0x38f   :  { %v2787_v47 = vadd.f32 %v2786_v12, %v2785_v36  ;;  %2844 = vmatpush3.bf16.msra.mxu0 %v2311_v54 }
 0x390   :  { %2845 = vmatprep.subr.bf16.mxu0 %v2996_v63  ;;  %v2413_v63 = vmul.f32 %v2593_v60, %v2406_v18 }
 0x391   :  { %v2040_v2 = vpack.c.bf16 %v2787_v47, %v2784_v29 }
 0x393   :  { %v2304_v55 = vadd.bf16 %v2591_v31, %v2040_v2 }
 0x395   :  { %v2312_v19 = vmax.bf16 %v2994_v3, %v2304_v55  ;;  %v2423_v3 = vadd.f32 %v2420_v56, %v2413_v63 }
 0x397   :  { %2846 = vmatpush3.bf16.msra.mxu0 %v2312_v19  ;;  %v2425_v61 = vmax.f32 %v2423_v3, 0.0 }
 0x399   :  { %v2435_v8 = vmul.f32 %v2432_v51, %v2425_v61 }
 0x39a   :  { %2848 = vmatmul.mubr.bf16.vlgmr.msra.gmra.mrb[64].mxu0 %v2965_v43 }
 0x39b   :  { %v2436_v30 = vadd.f32 %v2435_v8, %v2434_v1 }
 0x39d   :  { %v2437_v32 = vrot.slane %v2436_v30, 4 }
 0x39f   :  { %v2438_v62 = vadd.f32 %v2437_v32, %v2436_v30 }
 0x3a1   :  { %v2439_v34 = vrot.slane %v2438_v62, 2 }
 0x3a3   :  { %v2440_v48 = vadd.f32 %v2439_v34, %v2438_v62 }
 0x3a5   :  { %v2441_v49 = vrot.slane %v2440_v48, 1 }
 0x3a7   :  { %v2442_v40 = vadd.f32 %v2441_v49, %v2440_v48 }
 0x3a9   :  { %v2447_v59 = vadd.f32 %v2445_v17, %v2442_v40 }
 0x3ab   :  { %v2448_v16 = vmul.f32 %v2447_v59, %v2399_v37 }
 0x46d   :  { %v2367_v15 = vpop.f32.mrb[64].mxu0 }
 0x46e   :  { %v2368_v11 = vadd.f32 %v2367_v15, %v2320_v6  ;;  %v2849_v42 = vpop.f32.mrb[65].mxu0 }
 0x46f   :  { %v2370_v21 = vpop.f32.mrb[66].mxu0 }
 0x470   :  { %v2374_v26 = vmax.f32 %v2368_v11, 0.0  ;;  %v2371_v23 = vadd.f32 %v2370_v21, %v2325_v24  ;;  %v2850_v35 = vpop.f32.mrb[67].mxu0 }
 0x472   :  { %v2375_v45 = vmax.f32 %v2371_v23, 0.0  ;;  %v2384_v14 = vmul.f32 %v2378_v0, %v2374_v26 }
 0x474   :  { %v2385_v50 = vmul.f32 %v2382_v13, %v2375_v45 }
 0x476   :  { %v2386_v38 = vadd.f32 %v2385_v50, %v2384_v14 }
 0x478   :  { %v2387_v53 = vrot.slane %v2386_v38, 4 }
 0x47a   :  { %v2388_v58 = vadd.f32 %v2387_v53, %v2386_v38 }
 0x47c   :  { %v2389_v41 = vrot.slane %v2388_v58, 2 }
 0x47e   :  { %v2390_v5 = vadd.f32 %v2389_v41, %v2388_v58 }
 0x480   :  { %v2391_v46 = vrot.slane %v2390_v5, 1 }
 0x482   :  { %v2392_v22 = vadd.f32 %v2391_v46, %v2390_v5 }
 0x484   :  { %v2397_v10 = vadd.f32 %v2395_v9, %v2392_v22 }
 0x486   :  { %v2449_v25 = vadd.f32 %v2448_v16, %v2397_v10 }
 0x488   :  { %v2594_v57 = vmul.f32 -1.442695, %v2449_v25 }
 0x48a   :  { %2966 = vpow2.f32 %v2594_v57 }
 0x494   :  { %v2967_v33 = vpop.eup %2966 }
 0x495   :  { %v2453_v4 = vadd.f32 1.0, %v2967_v33 }
 0x497   :  { %2968 = vrcp.f32 %v2453_v4 }
 0x4a1   :  { %v2969_v52 = vpop.eup %2968 }
 0x4a2   :  { %2456 = vst [vmem:[#allocation2] sm:$0x1] %v2969_v52 }
 0x4a3   :  { %2981 = shalt.err (!%p2978_p4)
}
 0x4a4   :  { %s2982_s11 = scalar_lea.hbm %s3922_s10, 16 }
 0x4a5   :  { %p2983_p5 = scmp.ne.s32.totalorder %s3922_s10, %s2982_s11  ;;  %p2986_p6 = scmp.lt.u32.totalorder %s2982_s11, %s3922_s10 }
 0x4a7   :  { %p2988_p7 = pnand %p2986_p6, %p2983_p5 }
 0x4a9   :  { %2991 = shalt.err (!%p2988_p7)
}
 0x4aa   :  { %2466 = dma.vmem_to_hbm [thread:$0]  %s2464_s7, 16, %s3922_s10, [#allocation3]  }
 0x4ab   :  { %2992 = dma.done.wait [#allocation3], 16  }
 0x4ac   :  { %2993 = vsyncadd [#allocation3], 4294967280 }
 0x4ad   :  { %2470 = vsyncpa [#allocation3], 1 }

</bundles_post_ra>
